<compile_context>
chip_gen: v5e
topology: v5e:2x2
jax: 0.10.0
libtpu: 0.0.40
codegen_flags: <defaults>
</compile_context>

<pallas_src>
import functools

import jax
import jax.numpy as jnp
from jax import lax
from jax.experimental import pallas as pl
from jax.experimental.pallas import tpu as pltpu


def _round_up(x, m):
    return (x + m - 1) // m * m


def _supcon_kernel(feat_m_ref, feat_n_ref, lab_m_ref, lab_n_ref, o_ref,
                   m_scr, l_scr, pos_dot_scr, pos_cnt_scr, *,
                   n_total, inv_temperature, loss_scale):
    i = pl.program_id(0)                       # anchor-row block
    j = pl.program_id(1)                       # contrast-col block (reduction)
    bm = feat_m_ref.shape[0]
    bn = feat_n_ref.shape[0]

    @pl.when(j == 0)
    def _init():
        m_scr[...] = jnp.full_like(m_scr, -1e30)
        l_scr[...] = jnp.zeros_like(l_scr)
        pos_dot_scr[...] = jnp.zeros_like(pos_dot_scr)
        pos_cnt_scr[...] = jnp.zeros_like(pos_cnt_scr)

    # Similarity tile on the MXU; contract the last (lane) dim of both operands
    # so no transposed [D, bn] view is materialized.
    adc = lax.dot_general(
        feat_m_ref[...], feat_n_ref[...],
        dimension_numbers=(((1,), (1,)), ((), ())),
        preferred_element_type=jnp.float32) * inv_temperature          # [bm, bn]

    # In-kernel masks (no [N, N] mask DMA):
    #   lmask   = logits mask: drops the diagonal and padded columns
    #   pos_mask = class mask (label equality) * lmask
    row_ids = i * bm + lax.broadcasted_iota(jnp.int32, (bm, bn), 0)
    col_ids = j * bn + lax.broadcasted_iota(jnp.int32, (bm, bn), 1)
    col_valid = col_ids < n_total
    lmask = col_valid & (row_ids != col_ids)
    pos_mask = jnp.where(lmask & (lab_m_ref[...] == lab_n_ref[...]), 1.0, 0.0)

    # Online (flash-style) row max / rescaled denominator. The row max is taken
    # over all valid columns *including* the diagonal, matching torch.max(adc).
    tile_max = jnp.max(jnp.where(col_valid, adc, -1e30), axis=1, keepdims=True)
    m_prev = m_scr[...]
    m_new = jnp.maximum(m_prev, tile_max)
    alpha = jnp.exp(m_prev - m_new)
    p = jnp.where(lmask, jnp.exp(adc - m_new), 0.0)
    l_scr[...] = alpha * l_scr[...] + jnp.sum(p, axis=1, keepdims=True)
    m_scr[...] = m_new

    pos_dot_scr[...] += jnp.sum(pos_mask * adc, axis=1, keepdims=True)
    pos_cnt_scr[...] += jnp.sum(pos_mask, axis=1, keepdims=True)

    @pl.when(j == pl.num_programs(1) - 1)
    def _finalize():
        m = m_scr[...]
        # torch denominator: sum(exp(logits)*logits_mask + 1e-12)
        #   = exp(1e-12) * sum(exp(adc - m)*lmask) + N*1e-12, exp(1e-12)==1 in f32
        denom = l_scr[...] + n_total * 1e-12
        cnt = pos_cnt_scr[...]
        has_pos = cnt > 0.0
        safe_cnt = jnp.where(has_pos, cnt, 1.0)
        # sum(mask*log_prob)/cnt = sum(mask*adc)/cnt - m + 1e-12 - log(denom)
        mean_lp = pos_dot_scr[...] / safe_cnt - m + 1e-12 - jnp.log(denom)
        mean_lp = jnp.where(has_pos, mean_lp, 0.0)       # safe-divide fallback
        loss_rows = loss_scale * mean_lp                 # [bm, 1]
        # Lane-dense store: broadcast the per-row loss across 128 lanes.
        o_ref[...] = jnp.broadcast_to(loss_rows, o_ref.shape)


def supcon_loss(features, labels=None, mask=None, *, temperature=0.07,
                contrast_mode='all', base_temperature=0.07,
                block_m=128, block_n=128, matmul_dtype=jnp.bfloat16):
    """features: [bsz, n_views, ...]; labels: [bsz] int. Returns scalar loss."""
    if features.ndim < 3:
        raise ValueError('`features` needs to be [bsz, n_views, ...]')
    if features.ndim > 3:
        features = features.reshape(features.shape[0], features.shape[1], -1)
    if contrast_mode == 'one':
        # TODO(synk): contrast_mode='one' (anchor = view 0 only) not implemented.
        raise NotImplementedError("contrast_mode='one' is not implemented")
    if contrast_mode != 'all':
        raise ValueError(f'Unknown mode: {contrast_mode}')

    bsz, n_views, dim = features.shape
    if labels is not None and mask is not None:
        raise ValueError('Cannot define both `labels` and `mask`')
    if mask is not None:
        # TODO(synk): explicit (possibly asymmetric) [bsz, bsz] mask cannot be
        # rebuilt from label equality in-kernel; path not implemented.
        raise NotImplementedError('explicit `mask` is not implemented; pass labels')
    if labels is None:
        labels = jnp.arange(bsz, dtype=jnp.int32)       # SimCLR: mask = eye(bsz)
    labels = jnp.asarray(labels).reshape(-1).astype(jnp.int32)
    if labels.shape[0] != bsz:
        raise ValueError('Num of labels does not match num of features')

    n = n_views * bsz
    # contrast_feature = cat(unbind(features, 1), 0) -> view-major [N, D]
    cf = jnp.transpose(features, (1, 0, 2)).reshape(n, dim)
    labels_full = jnp.tile(labels, n_views)             # [N]

    d_pad = _round_up(dim, 128)
    n_pad = _round_up(_round_up(n, block_m), block_n)
    assert n_pad % block_m == 0 and n_pad % block_n == 0

    # Padded features (zero rows/cols) cast once to the MXU input dtype.
    feat_p = jnp.zeros((n_pad, d_pad), matmul_dtype)
    feat_p = feat_p.at[:n, :dim].set(cf.astype(matmul_dtype))
    # Tiny label vectors (row / col views) instead of an [N, N] mask.
    lab_row = jnp.full((n_pad, 1), -1, jnp.int32).at[:n, 0].set(labels_full)
    lab_col = jnp.full((1, n_pad), -2, jnp.int32).at[0, :n].set(labels_full)

    grid = (n_pad // block_m, n_pad // block_n)
    kernel = functools.partial(
        _supcon_kernel,
        n_total=int(n),
        inv_temperature=float(1.0 / temperature),
        loss_scale=float(-(temperature / base_temperature)))

    out = pl.pallas_call(
        kernel,
        out_shape=jax.ShapeDtypeStruct((n_pad, 128), jnp.float32),
        grid=grid,
        in_specs=[
            pl.BlockSpec((block_m, d_pad), lambda i, j: (i, 0)),   # anchor rows
            pl.BlockSpec((block_n, d_pad), lambda i, j: (j, 0)),   # contrast cols
            pl.BlockSpec((block_m, 1), lambda i, j: (i, 0)),       # row labels
            pl.BlockSpec((1, block_n), lambda i, j: (0, j)),       # col labels
        ],
        out_specs=pl.BlockSpec((block_m, 128), lambda i, j: (i, 0)),
        scratch_shapes=[
            pltpu.VMEM((block_m, 1), jnp.float32),   # running row max
            pltpu.VMEM((block_m, 1), jnp.float32),   # running exp-sum (denominator)
            pltpu.VMEM((block_m, 1), jnp.float32),   # running sum(mask * adc)
            pltpu.VMEM((block_m, 1), jnp.float32),   # running sum(mask)
        ],
        compiler_params=pltpu.CompilerParams(
            dimension_semantics=("parallel", "arbitrary"),
            vmem_limit_bytes=32 * 1024 * 1024),
    )(feat_p, feat_p, lab_row, lab_col)

    per_row_loss = out[:n, 0]
    return jnp.mean(per_row_loss)


def _supcon_loss_ref(features, labels=None, *, temperature=0.07,
                     base_temperature=0.07):
    """Pure-JAX f32 reference reproducing the PyTorch forward (mode='all')."""
    bsz, n_views, dim = features.shape
    if labels is None:
        mask = jnp.eye(bsz, dtype=jnp.float32)
    else:
        labels = labels.reshape(-1, 1)
        mask = (labels == labels.T).astype(jnp.float32)
    cf = jnp.transpose(features, (1, 0, 2)).reshape(n_views * bsz, dim)
    adc = jnp.dot(cf, cf.T) / temperature
    logits = adc - jnp.max(adc, axis=1, keepdims=True) + 1e-12
    n = n_views * bsz
    logits_mask = 1.0 - jnp.eye(n, dtype=jnp.float32)
    mask = jnp.tile(mask, (n_views, n_views)) * logits_mask
    exp_logits = jnp.exp(logits) * logits_mask + 1e-12
    log_prob = logits - jnp.log(jnp.sum(exp_logits, axis=1, keepdims=True))
    mean_log_prob_pos = jnp.sum(mask * log_prob, axis=1) / jnp.sum(mask, axis=1)
    loss = -(temperature / base_temperature) * mean_log_prob_pos
    return jnp.mean(loss)


if __name__ == "__main__":
    key = jax.random.PRNGKey(0)
    bsz, n_views, dim = 8, 2, 32
    kf, kl = jax.random.split(key)
    feats = jax.random.normal(kf, (bsz, n_views, dim), dtype=jnp.float32)
    # L2-normalize per embedding (typical SupCon usage)
    feats = feats / jnp.linalg.norm(feats, axis=-1, keepdims=True)
    labels = jax.random.randint(kl, (bsz,), 0, 3)

    # Exact-math check: f32 MXU path vs. f32 reference.
    loss_f32 = jax.block_until_ready(
        supcon_loss(feats, labels=labels, matmul_dtype=jnp.float32))
    ref = jax.block_until_ready(_supcon_loss_ref(feats, labels))
    assert jnp.allclose(loss_f32, ref, atol=1e-4, rtol=1e-4), (loss_f32, ref)

    # Default fast path: bf16 MXU matmul, f32 softmax math (looser tolerance).
    loss_bf16 = jax.block_until_ready(supcon_loss(feats, labels=labels))
    assert jnp.allclose(loss_bf16, ref, atol=5e-2, rtol=5e-2), (loss_bf16, ref)

    # SimCLR path (labels=None and mask=None -> identity mask).
    loss_simclr = jax.block_until_ready(
        supcon_loss(feats, matmul_dtype=jnp.float32))
    ref_simclr = jax.block_until_ready(_supcon_loss_ref(feats, None))
    assert jnp.allclose(loss_simclr, ref_simclr, atol=1e-4, rtol=1e-4), (
        loss_simclr, ref_simclr)

    print("KERNEL_OK")
</pallas_src>

<mosaic_0001>
module attributes {stable_mosaic.version = 11 : i64} {
  func.func @_supcon_kernel(%arg0: i32, %arg1: i32, %arg2: memref<128x128xf32, #tpu.memory_space<vmem>>, %arg3: memref<128x128xf32, #tpu.memory_space<vmem>>, %arg4: memref<128x1xi32, #tpu.memory_space<vmem>>, %arg5: memref<1x128xi32, #tpu.memory_space<vmem>>, %arg6: memref<128x128xf32, #tpu.memory_space<vmem>>, %arg7: memref<128x1xf32, #tpu.memory_space<vmem>>, %arg8: memref<128x1xf32, #tpu.memory_space<vmem>>, %arg9: memref<128x1xf32, #tpu.memory_space<vmem>>, %arg10: memref<128x1xf32, #tpu.memory_space<vmem>>) attributes {dimension_semantics = [#tpu.dimension_semantics<parallel>, #tpu.dimension_semantics<arbitrary>], iteration_bounds = array<i64: 1, 1>, scalar_prefetch = 0 : i64, scratch_operands = 4 : i64, tpu.core_type = #tpu.core_type<tc>, window_params = [{transform_indices = @transform_0, window_bounds = array<i64: 128, 128>}, {transform_indices = @transform_1, window_bounds = array<i64: 128, 128>}, {transform_indices = @transform_2, window_bounds = array<i64: 128, 1>}, {transform_indices = @transform_3, window_bounds = array<i64: 1, 128>}, {transform_indices = @transform_4, window_bounds = array<i64: 128, 128>}]} {
    %c0_i32 = arith.constant 0 : i32
    %0 = arith.cmpi eq, %arg1, %c0_i32 : i32
    %1 = arith.extui %0 : i1 to i32
    %c0_i32_0 = arith.constant 0 : i32
    %2 = arith.cmpi ne, %1, %c0_i32_0 : i32
    scf.if %2 {
      %cst_36 = arith.constant -1.000000e+30 : f32
      %63 = vector.broadcast %cst_36 : f32 to vector<128x1xf32>
      %c0_37 = arith.constant 0 : index
      %c0_38 = arith.constant 0 : index
      %64 = vector.load %arg7[%c0_37, %c0_38] : memref<128x1xf32, #tpu.memory_space<vmem>>, vector<128x1xf32>
      tpu.vector_store %arg7[%c0_37, %c0_38], %63 {strides = array<i32>} : memref<128x1xf32, #tpu.memory_space<vmem>>, vector<128x1xf32>,
      %cst_39 = arith.constant 0.000000e+00 : f32
      %65 = vector.broadcast %cst_39 : f32 to vector<128x1xf32>
      %c0_40 = arith.constant 0 : index
      %c0_41 = arith.constant 0 : index
      %66 = vector.load %arg8[%c0_40, %c0_41] : memref<128x1xf32, #tpu.memory_space<vmem>>, vector<128x1xf32>
      tpu.vector_store %arg8[%c0_40, %c0_41], %65 {strides = array<i32>} : memref<128x1xf32, #tpu.memory_space<vmem>>, vector<128x1xf32>,
      %cst_42 = arith.constant 0.000000e+00 : f32
      %67 = vector.broadcast %cst_42 : f32 to vector<128x1xf32>
      %c0_43 = arith.constant 0 : index
      %c0_44 = arith.constant 0 : index
      %68 = vector.load %arg9[%c0_43, %c0_44] : memref<128x1xf32, #tpu.memory_space<vmem>>, vector<128x1xf32>
      tpu.vector_store %arg9[%c0_43, %c0_44], %67 {strides = array<i32>} : memref<128x1xf32, #tpu.memory_space<vmem>>, vector<128x1xf32>,
      %cst_45 = arith.constant 0.000000e+00 : f32
      %69 = vector.broadcast %cst_45 : f32 to vector<128x1xf32>
      %c0_46 = arith.constant 0 : index
      %c0_47 = arith.constant 0 : index
      %70 = vector.load %arg10[%c0_46, %c0_47] : memref<128x1xf32, #tpu.memory_space<vmem>>, vector<128x1xf32>
      tpu.vector_store %arg10[%c0_46, %c0_47], %69 {strides = array<i32>} : memref<128x1xf32, #tpu.memory_space<vmem>>, vector<128x1xf32>,
    } else {
    }
    %c0 = arith.constant 0 : index
    %c0_1 = arith.constant 0 : index
    %3 = vector.load %arg2[%c0, %c0_1] : memref<128x128xf32, #tpu.memory_space<vmem>>, vector<128x128xf32>
    %c0_2 = arith.constant 0 : index
    %c0_3 = arith.constant 0 : index
    %4 = vector.load %arg3[%c0_2, %c0_3] : memref<128x128xf32, #tpu.memory_space<vmem>>, vector<128x128xf32>
    %cst = arith.constant dense<0.000000e+00> : vector<128x128xf32>
    %5 = tpu.matmul %3, %4, %cst {dimension_numbers = #tpu.dot_dimension_numbers<[1], [1], [0], [0], [0, 0, 1, 0], [], []>} : vector<128x128xf32>, vector<128x128xf32>, vector<128x128xf32> -> vector<128x128xf32>
    %cst_4 = arith.constant 14.2857141 : f32
    %6 = vector.broadcast %cst_4 : f32 to vector<128x128xf32>
    %7 = arith.mulf %5, %6 : vector<128x128xf32>
    %c128_i32 = arith.constant 128 : i32
    %8 = arith.muli %arg0, %c128_i32 : i32
    %9 = tpu.iota {dimensions = array<i32: 0>} : vector<128x128xi32>
    %10 = vector.broadcast %8 : i32 to vector<128x128xi32>
    %11 = arith.addi %10, %9 : vector<128x128xi32>
    %c128_i32_5 = arith.constant 128 : i32
    %12 = arith.muli %arg1, %c128_i32_5 : i32
    %13 = tpu.iota {dimensions = array<i32: 1>} : vector<128x128xi32>
    %14 = vector.broadcast %12 : i32 to vector<128x128xi32>
    %15 = arith.addi %14, %13 : vector<128x128xi32>
    %c16_i32 = arith.constant 16 : i32
    %16 = vector.broadcast %c16_i32 : i32 to vector<128x128xi32>
    %17 = arith.cmpi slt, %15, %16 : vector<128x128xi32>
    %18 = arith.cmpi ne, %11, %15 : vector<128x128xi32>
    %19 = arith.andi %17, %18 : vector<128x128xi1>
    %c0_6 = arith.constant 0 : index
    %c0_7 = arith.constant 0 : index
    %20 = vector.load %arg4[%c0_6, %c0_7] : memref<128x1xi32, #tpu.memory_space<vmem>>, vector<128x1xi32>
    %c0_8 = arith.constant 0 : index
    %c0_9 = arith.constant 0 : index
    %21 = vector.load %arg5[%c0_8, %c0_9] : memref<1x128xi32, #tpu.memory_space<vmem>>, vector<1x128xi32>
    %22 = vector.broadcast %20 : vector<128x1xi32> to vector<128x128xi32>
    %23 = vector.broadcast %21 : vector<1x128xi32> to vector<128x128xi32>
    %24 = arith.cmpi eq, %22, %23 : vector<128x128xi32>
    %25 = arith.andi %19, %24 : vector<128x128xi1>
    %cst_10 = arith.constant 1.000000e+00 : f32
    %cst_11 = arith.constant 0.000000e+00 : f32
    %26 = vector.broadcast %cst_10 : f32 to vector<128x128xf32>
    %27 = vector.broadcast %cst_11 : f32 to vector<128x128xf32>
    %28 = arith.select %25, %26, %27 : vector<128x128xi1>, vector<128x128xf32>
    %cst_12 = arith.constant -1.000000e+30 : f32
    %29 = vector.broadcast %cst_12 : f32 to vector<128x128xf32>
    %30 = arith.select %17, %7, %29 : vector<128x128xi1>, vector<128x128xf32>
    %cst_13 = arith.constant dense<0xFF800000> : vector<128xf32>
    %31 = vector.multi_reduction <maximumf>, %30, %cst_13 [1] : vector<128x128xf32> to vector<128xf32>
    %32 = vector.shape_cast %31 : vector<128xf32> to vector<128x1xf32>
    %c0_14 = arith.constant 0 : index
    %c0_15 = arith.constant 0 : index
    %33 = vector.load %arg7[%c0_14, %c0_15] : memref<128x1xf32, #tpu.memory_space<vmem>>, vector<128x1xf32>
    %34 = arith.maximumf %33, %32 : vector<128x1xf32>
    %35 = arith.subf %33, %34 : vector<128x1xf32>
    %36 = math.exp %35 : vector<128x1xf32>
    %37 = vector.broadcast %34 : vector<128x1xf32> to vector<128x128xf32>
    %38 = arith.subf %7, %37 : vector<128x128xf32>
    %39 = math.exp %38 : vector<128x128xf32>
    %cst_16 = arith.constant 0.000000e+00 : f32
    %40 = vector.broadcast %cst_16 : f32 to vector<128x128xf32>
    %41 = arith.select %19, %39, %40 : vector<128x128xi1>, vector<128x128xf32>
    %c0_17 = arith.constant 0 : index
    %c0_18 = arith.constant 0 : index
    %42 = vector.load %arg8[%c0_17, %c0_18] : memref<128x1xf32, #tpu.memory_space<vmem>>, vector<128x1xf32>
    %43 = arith.mulf %36, %42 : vector<128x1xf32>
    %cst_19 = arith.constant dense<0.000000e+00> : vector<128xf32>
    %44 = vector.multi_reduction <add>, %41, %cst_19 [1] : vector<128x128xf32> to vector<128xf32>
    %45 = vector.shape_cast %44 : vector<128xf32> to vector<128x1xf32>
    %46 = arith.addf %43, %45 : vector<128x1xf32>
    %c0_20 = arith.constant 0 : index
    %c0_21 = arith.constant 0 : index
    %47 = vector.load %arg8[%c0_20, %c0_21] : memref<128x1xf32, #tpu.memory_space<vmem>>, vector<128x1xf32>
    tpu.vector_store %arg8[%c0_20, %c0_21], %46 {strides = array<i32>} : memref<128x1xf32, #tpu.memory_space<vmem>>, vector<128x1xf32>,
    %c0_22 = arith.constant 0 : index
    %c0_23 = arith.constant 0 : index
    %48 = vector.load %arg7[%c0_22, %c0_23] : memref<128x1xf32, #tpu.memory_space<vmem>>, vector<128x1xf32>
    tpu.vector_store %arg7[%c0_22, %c0_23], %34 {strides = array<i32>} : memref<128x1xf32, #tpu.memory_space<vmem>>, vector<128x1xf32>,
    %c0_24 = arith.constant 0 : index
    %c0_25 = arith.constant 0 : index
    %49 = vector.load %arg9[%c0_24, %c0_25] : memref<128x1xf32, #tpu.memory_space<vmem>>, vector<128x1xf32>
    %50 = arith.mulf %28, %7 : vector<128x128xf32>
    %cst_26 = arith.constant dense<0.000000e+00> : vector<128xf32>
    %51 = vector.multi_reduction <add>, %50, %cst_26 [1] : vector<128x128xf32> to vector<128xf32>
    %52 = vector.shape_cast %51 : vector<128xf32> to vector<128x1xf32>
    %53 = arith.addf %49, %52 : vector<128x1xf32>
    %c0_27 = arith.constant 0 : index
    %c0_28 = arith.constant 0 : index
    %54 = vector.load %arg9[%c0_27, %c0_28] : memref<128x1xf32, #tpu.memory_space<vmem>>, vector<128x1xf32>
    tpu.vector_store %arg9[%c0_27, %c0_28], %53 {strides = array<i32>} : memref<128x1xf32, #tpu.memory_space<vmem>>, vector<128x1xf32>,
    %c0_29 = arith.constant 0 : index
    %c0_30 = arith.constant 0 : index
    %55 = vector.load %arg10[%c0_29, %c0_30] : memref<128x1xf32, #tpu.memory_space<vmem>>, vector<128x1xf32>
    %cst_31 = arith.constant dense<0.000000e+00> : vector<128xf32>
    %56 = vector.multi_reduction <add>, %28, %cst_31 [1] : vector<128x128xf32> to vector<128xf32>
    %57 = vector.shape_cast %56 : vector<128xf32> to vector<128x1xf32>
    %58 = arith.addf %55, %57 : vector<128x1xf32>
    %c0_32 = arith.constant 0 : index
    %c0_33 = arith.constant 0 : index
    %59 = vector.load %arg10[%c0_32, %c0_33] : memref<128x1xf32, #tpu.memory_space<vmem>>, vector<128x1xf32>
    tpu.vector_store %arg10[%c0_32, %c0_33], %58 {strides = array<i32>} : memref<128x1xf32, #tpu.memory_space<vmem>>, vector<128x1xf32>,
    %c0_i32_34 = arith.constant 0 : i32
    %60 = arith.cmpi eq, %arg1, %c0_i32_34 : i32
    %61 = arith.extui %60 : i1 to i32
    %c0_i32_35 = arith.constant 0 : i32
    %62 = arith.cmpi ne, %61, %c0_i32_35 : i32
    scf.if %62 {
      %c0_36 = arith.constant 0 : index
      %c0_37 = arith.constant 0 : index
      %63 = vector.load %arg7[%c0_36, %c0_37] : memref<128x1xf32, #tpu.memory_space<vmem>>, vector<128x1xf32>
      %c0_38 = arith.constant 0 : index
      %c0_39 = arith.constant 0 : index
      %64 = vector.load %arg8[%c0_38, %c0_39] : memref<128x1xf32, #tpu.memory_space<vmem>>, vector<128x1xf32>
      %cst_40 = arith.constant 1.600000e-11 : f32
      %65 = vector.broadcast %cst_40 : f32 to vector<128x1xf32>
      %66 = arith.addf %64, %65 : vector<128x1xf32>
      %c0_41 = arith.constant 0 : index
      %c0_42 = arith.constant 0 : index
      %67 = vector.load %arg10[%c0_41, %c0_42] : memref<128x1xf32, #tpu.memory_space<vmem>>, vector<128x1xf32>
      %cst_43 = arith.constant 0.000000e+00 : f32
      %68 = vector.broadcast %cst_43 : f32 to vector<128x1xf32>
      %69 = arith.cmpf ogt, %67, %68 : vector<128x1xf32>
      %cst_44 = arith.constant 1.000000e+00 : f32
      %70 = vector.broadcast %cst_44 : f32 to vector<128x1xf32>
      %71 = arith.select %69, %67, %70 : vector<128x1xi1>, vector<128x1xf32>
      %c0_45 = arith.constant 0 : index
      %c0_46 = arith.constant 0 : index
      %72 = vector.load %arg9[%c0_45, %c0_46] : memref<128x1xf32, #tpu.memory_space<vmem>>, vector<128x1xf32>
      %73 = arith.divf %72, %71 : vector<128x1xf32>
      %74 = arith.subf %73, %63 : vector<128x1xf32>
      %cst_47 = arith.constant 9.99999996E-13 : f32
      %75 = vector.broadcast %cst_47 : f32 to vector<128x1xf32>
      %76 = arith.addf %74, %75 : vector<128x1xf32>
      %77 = math.log %66 : vector<128x1xf32>
      %78 = arith.subf %76, %77 : vector<128x1xf32>
      %cst_48 = arith.constant 0.000000e+00 : f32
      %79 = vector.broadcast %cst_48 : f32 to vector<128x1xf32>
      %80 = arith.select %69, %78, %79 : vector<128x1xi1>, vector<128x1xf32>
      %cst_49 = arith.constant -1.000000e+00 : f32
      %81 = vector.broadcast %cst_49 : f32 to vector<128x1xf32>
      %82 = arith.mulf %81, %80 : vector<128x1xf32>
      %83 = vector.shape_cast %82 : vector<128x1xf32> to vector<128x1xf32>
      %84 = vector.broadcast %83 : vector<128x1xf32> to vector<128x128xf32>
      %c0_50 = arith.constant 0 : index
      %c0_51 = arith.constant 0 : index
      %85 = vector.load %arg6[%c0_50, %c0_51] : memref<128x128xf32, #tpu.memory_space<vmem>>, vector<128x128xf32>
      tpu.vector_store %arg6[%c0_50, %c0_51], %84 {strides = array<i32>} : memref<128x128xf32, #tpu.memory_space<vmem>>, vector<128x128xf32>,
    } else {
    }
    return
  }
  func.func @transform_0(%arg0: i32, %arg1: i32) -> (i32, i32) {
    %c0_i32 = arith.constant 0 : i32
    %c0_i32_0 = arith.constant 0 : i32
    return %arg0, %c0_i32 : i32, i32
  }
  func.func @transform_1(%arg0: i32, %arg1: i32) -> (i32, i32) {
    %c0_i32 = arith.constant 0 : i32
    %c0_i32_0 = arith.constant 0 : i32
    return %arg1, %c0_i32 : i32, i32
  }
  func.func @transform_2(%arg0: i32, %arg1: i32) -> (i32, i32) {
    %c0_i32 = arith.constant 0 : i32
    %c0_i32_0 = arith.constant 0 : i32
    return %arg0, %c0_i32 : i32, i32
  }
  func.func @transform_3(%arg0: i32, %arg1: i32) -> (i32, i32) {
    %c0_i32 = arith.constant 0 : i32
    %c0_i32_0 = arith.constant 0 : i32
    return %c0_i32, %arg1 : i32, i32
  }
  func.func @transform_4(%arg0: i32, %arg1: i32) -> (i32, i32) {
    %c0_i32 = arith.constant 0 : i32
    %c0_i32_0 = arith.constant 0 : i32
    return %arg0, %c0_i32 : i32, i32
  }
}

</mosaic_0001>

<bundles_post_ra>
// kernel: tpu_custom_call.1
= control target key start
LH: loop header
LB: loop body
LE: loop exit
PB: predicated region body
PF: predicated region fallthrough
CT: control target
= control target key end

     0   :  { %9 = vsyncpa [#allocation7], 0  ;;  %s3327_s0 = inlined_call_operand.vmem [shape: f32[128,128], index: 0, kind: input, shape index: {}]   ;;  %s3328_s1 = inlined_call_operand.hbm [shape: f32[128,128], index: 1, kind: input, shape index: {}]   ;;  %s3329_s2 = inlined_call_operand.vmem [shape: s32[128,1], index: 2, kind: input, shape index: {}]   ;;  %s3330_s3 = inlined_call_operand.vmem [shape: s32[1,128], index: 3, kind: input, shape index: {}]   ;;  %s3331_s4 = inlined_call_operand.hbm [shape: f32[128,128], index: 4, kind: output, shape index: {}]  }
   0x1   :  { %10 = vsyncpa [#allocation8], 0  ;;  %s17_s17 = sshll.u32 %s3328_s1, 4  ;;  %s1785_s18 = smov [#allocation6]   ;;  %s18_s17 = int_to_ptr.hbm [resolvable:$true] %s17_s17 }
   0x2   :  { %s19_s19 = sshll.u32 %s1785_s18, 4  ;;  %s1786_s20 = smov 128   ;;  %s20_s19 = int_to_ptr.vmem [resolvable:$true] %s19_s19 }
   0x3   :  { %s1787_s21 = smov 8  }
   0x4   :  { %25 = dma.hbm_to_vmem [thread:$0]  %s18_s17, 2048, %s20_s19, [#allocation7], %s1786_s20, %s1786_s20, %s1787_s21  }
   0x5   :  { %1781 = dma.done.wait [#allocation7], 2048  }
   0x6   :  { %1782 = vsyncadd [#allocation7], 4294965248  ;;  %v1788_v0 = vmov 0   ;;  %v291_v1 = vld [vmem:[%s3329_s2 + $0x10] sm:$0xff]  ;;  %v289_v2 = vld [vmem:[%s3329_s2] sm:$0xff]  ;;  %v217_v50 = vlaneseq  ;;  %v3364_v58 = vmov 0 }
   0x7   :  { %1602 = vset.pattern.permute.xlu1 %v1788_v0  ;;  %1601 = vset.pattern.permute.xlu0 %v1788_v0  ;;  %v134_v3 = vld [vmem:[#allocation6 + $0x78] sm:$0xff]  ;;  %v133_v4 = vld [vmem:[#allocation6 + $0x70] sm:$0xff]  ;;  %v293_v5 = vld [vmem:[%s3329_s2 + $0x20] sm:$0xff]  ;;  %s1533_s11 = sshll.u32 %s3331_s4, 4  ;;  %s1534_s11 = int_to_ptr.hbm [resolvable:$true] %s1533_s11 }
   0x8   :  { %1603 = vset.pattern.permute.xlu2 %v1788_v0  ;;  %313 = vperm.xlu1 %1602, %v291_v1   ;;  %v292_v6 = vld [vmem:[%s3329_s2 + $0x18] sm:$0xff]  ;;  %v290_v7 = vld [vmem:[%s3329_s2 + $0x8] sm:$0xff]  ;;  %v131_v10 = vld [vmem:[#allocation6 + $0x60] sm:$0xff]  ;;  %v1919_v51 = vshrl.u32 %v217_v50, 7  ;;  %v1922_v53 = vand.u32 127, %v217_v50 }
   0x9   :  { %307 = vperm.xlu0 %1601, %v289_v2   ;;  %135 = vmatpush.xpose.msra.mxu0 %v134_v3  ;;  %v132_v8 = vld [vmem:[#allocation6 + $0x68] sm:$0xff]  ;;  %v295_v11 = vld [vmem:[%s3329_s2 + $0x30] sm:$0xff]  ;;  %v296_v12 = vld [vmem:[%s3329_s2 + $0x38] sm:$0xff]  ;;  %v1789_v2 = vmov 0.0  }
   0xa   :  { %1546 = vmatpush.xpose.msra.mxu1 %v134_v3  ;;  %1547 = vmatpush.xpose.msra.mxu2 %v134_v3  ;;  %v294_v9 = vld [vmem:[%s3329_s2 + $0x28] sm:$0xff]  ;;  %v130_v13 = vld [vmem:[#allocation6 + $0x58] sm:$0xff]  ;;  %v297_v14 = vld [vmem:[%s3329_s2 + $0x40] sm:$0xff]  ;;  %v220_v52 = vadd.s32 16, %v1919_v51  ;;  %v223_v55 = vadd.s32 40, %v1919_v51  ;;  %vm3332_vm0 = vcmp.lt.s32.totalorder %v1922_v53, 16  ;;  %vm257_vm2 = vcmp.ne.s32.totalorder %v1919_v51, %v1922_v53 }
   0xb   :  { %1548 = vmatpush.xpose.msra.mxu3 %v134_v3  ;;  %319 = vperm.xlu2 %1603, %v293_v5   ;;  %v129_v15 = vld [vmem:[#allocation6 + $0x50] sm:$0xff]  ;;  %v298_v16 = vld [vmem:[%s3329_s2 + $0x48] sm:$0xff]  ;;  %v300_v19 = vld [vmem:[%s3329_s2 + $0x58] sm:$0xff]  ;;  %v221_v57 = vadd.s32 24, %v1919_v51  ;;  %v219_v62 = vadd.s32 8, %v1919_v51  ;;  %v226_v0 = vadd.s32 64, %v1919_v51 }
   0xc   :  { %v299_v17 = vld [vmem:[%s3329_s2 + $0x50] sm:$0xff]  ;;  %v128_v18 = vld [vmem:[#allocation6 + $0x48] sm:$0xff]  ;;  %v127_v20 = vld [vmem:[#allocation6 + $0x40] sm:$0xff]  ;;  %vm259_vm1 = vcmp.ne.s32.totalorder %v220_v52, %v1922_v53  ;;  %vm262_vm3 = vcmp.ne.s32.totalorder %v223_v55, %v1922_v53  ;;  %v222_v1 = vadd.s32 32, %v1919_v51 }
   0xd   :  { %136 = vmatpush.xpose.msra.mxu0 %v133_v4  ;;  %v301_v21 = vld [vmem:[%s3329_s2 + $0x60] sm:$0xff]  ;;  %v302_v22 = vld [vmem:[%s3329_s2 + $0x68] sm:$0xff]  ;;  %v126_v23 = vld [vmem:[#allocation6 + $0x38] sm:$0xff]  ;;  %vm260_vm10 = vcmp.ne.s32.totalorder %v221_v57, %v1922_v53  ;;  %vm258_vm13 = vcmp.ne.s32.totalorder %v219_v62, %v1922_v53  ;;  %vm265_vm15 = vcmp.ne.s32.totalorder %v226_v0, %v1922_v53 }
   0xe   :  { %1549 = vmatpush.xpose.msra.mxu1 %v133_v4  ;;  %1550 = vmatpush.xpose.msra.mxu2 %v133_v4  ;;  %v303_v24 = vld [vmem:[%s3329_s2 + $0x70] sm:$0xff]  ;;  %v304_v26 = vld [vmem:[%s3329_s2 + $0x78] sm:$0xff]  ;;  %v124_v27 = vld [vmem:[#allocation6 + $0x28] sm:$0xff] }
   0xf   :  { %1551 = vmatpush.xpose.msra.mxu3 %v133_v4  ;;  %v125_v25 = vld [vmem:[#allocation6 + $0x30] sm:$0xff]  ;;  %v123_v28 = vld [vmem:[#allocation6 + $0x20] sm:$0xff]  ;;  %v122_v29 = vld [vmem:[#allocation6 + $0x18] sm:$0xff] }
  0x10   :  { %316 = vperm.xlu1 %1602, %v292_v6   ;;  %v121_v30 = vld [vmem:[#allocation6 + $0x10] sm:$0xff]  ;;  %v120_v31 = vld [vmem:[#allocation6 + $0x8] sm:$0xff]  ;;  %v119_v32 = vld [vmem:[#allocation6] sm:$0xff]  ;;  %v3370_v6 = vmov 0 }
  0x11   :  { %310 = vperm.xlu0 %1601, %v290_v7   ;;  %137 = vmatpush.xpose.msra.mxu0 %v132_v8  ;;  %v103_v33 = vld [vmem:[%s3327_s0] sm:$0xff]  ;;  %v104_v37 = vld [vmem:[%s3327_s0 + $0x8] sm:$0xff]  ;;  %v105_v41 = vld [vmem:[%s3327_s0 + $0x10] sm:$0xff] }
  0x12   :  { %1552 = vmatpush.xpose.msra.mxu1 %v132_v8  ;;  %1553 = vmatpush.xpose.msra.mxu2 %v132_v8  ;;  %v107_v34 = vld [vmem:[%s3327_s0 + $0x20] sm:$0xff]  ;;  %v108_v38 = vld [vmem:[%s3327_s0 + $0x28] sm:$0xff]  ;;  %v109_v42 = vld [vmem:[%s3327_s0 + $0x30] sm:$0xff] }
  0x13   :  { %1554 = vmatpush.xpose.msra.mxu3 %v132_v8  ;;  %322 = vperm.xlu2 %1603, %v294_v9   ;;  %v111_v35 = vld [vmem:[%s3327_s0 + $0x40] sm:$0xff]  ;;  %v112_v39 = vld [vmem:[%s3327_s0 + $0x48] sm:$0xff]  ;;  %v113_v43 = vld [vmem:[%s3327_s0 + $0x50] sm:$0xff] }
  0x14   :  { %v115_v36 = vld [vmem:[%s3327_s0 + $0x60] sm:$0xff]  ;;  %v116_v40 = vld [vmem:[%s3327_s0 + $0x68] sm:$0xff]  ;;  %v117_v44 = vld [vmem:[%s3327_s0 + $0x70] sm:$0xff] }
  0x15   :  { %138 = vmatpush.xpose.msra.mxu0 %v131_v10  ;;  %v106_v45 = vld [vmem:[%s3327_s0 + $0x18] sm:$0xff]  ;;  %v1930_v56 = vld [vmem:[%s3330_s3] ss:$0 sm:$0xff]  ;;  %vm1938_vm4 = vmand %vm3332_vm0, %vm259_vm1  ;;  %s1791_s3 = smov [#allocation9]  }
  0x16   :  { %1555 = vmatpush.xpose.msra.mxu1 %v131_v10  ;;  %1556 = vmatpush.xpose.msra.mxu2 %v131_v10  ;;  %v110_v46 = vld [vmem:[%s3327_s0 + $0x38] sm:$0xff]  ;;  %v3365_v58 = vsel %vm1938_vm4, 4294967295, %v3364_v58  ;;  %vm1944_vm5 = vmand %vm3332_vm0, %vm257_vm2  ;;  %vm261_vm2 = vcmp.ne.s32.totalorder %v222_v1, %v1922_v53  ;;  %s1531_s8 = sshll.u32 %s1791_s3, 4  ;;  %s1532_s8 = int_to_ptr.vmem [resolvable:$true] %s1531_s8 }
  0x17   :  { %1557 = vmatpush.xpose.msra.mxu3 %v131_v10  ;;  %v114_v47 = vld [vmem:[%s3327_s0 + $0x58] sm:$0xff]  ;;  %vm1953_vm8 = vmand %vm3332_vm0, %vm262_vm3 }
  0x18   :  { %328 = vperm.xlu1 %1602, %v296_v12   ;;  %v118_v48 = vld [vmem:[%s3327_s0 + $0x78] sm:$0xff]  ;;  %vm1976_vm14 = vmand %vm3332_vm0, %vm260_vm10 }
  0x19   :  { %325 = vperm.xlu0 %1601, %v295_v11   ;;  %139 = vmatpush.xpose.msra.mxu0 %v130_v13  ;;  %v3371_v6 = vsel %vm1976_vm14, 4294967295, %v3370_v6  ;;  %vm1986_vm3 = vmand %vm3332_vm0, %vm258_vm13  ;;  %v224_v11 = vadd.s32 48, %v1919_v51 }
  0x1a   :  { %1558 = vmatpush.xpose.msra.mxu1 %v130_v13  ;;  %1559 = vmatpush.xpose.msra.mxu2 %v130_v13  ;;  %vm2004_vm10 = vmand %vm3332_vm0, %vm261_vm2 }
  0x1b   :  { %1560 = vmatpush.xpose.msra.mxu3 %v130_v13  ;;  %331 = vperm.xlu2 %1603, %v297_v14  }
  0x1d   :  { %140 = vmatpush.xpose.msra.mxu0 %v129_v15 }
  0x1e   :  { %1561 = vmatpush.xpose.msra.mxu1 %v129_v15  ;;  %1562 = vmatpush.xpose.msra.mxu2 %v129_v15 }
  0x1f   :  { %1563 = vmatpush.xpose.msra.mxu3 %v129_v15 }
  0x20   :  { %337 = vperm.xlu1 %1602, %v299_v17   ;;  %v225_v17 = vadd.s32 56, %v1919_v51 }
  0x21   :  { %334 = vperm.xlu0 %1601, %v298_v16   ;;  %141 = vmatpush.xpose.msra.mxu0 %v128_v18  ;;  %v229_v16 = vadd.s32 88, %v1919_v51 }
  0x22   :  { %1564 = vmatpush.xpose.msra.mxu1 %v128_v18  ;;  %1565 = vmatpush.xpose.msra.mxu2 %v128_v18 }
  0x23   :  { %1566 = vmatpush.xpose.msra.mxu3 %v128_v18  ;;  %340 = vperm.xlu2 %1603, %v300_v19   ;;  %v227_v19 = vadd.s32 72, %v1919_v51 }
  0x25   :  { %142 = vmatpush.xpose.msra.mxu0 %v127_v20 }
  0x26   :  { %1567 = vmatpush.xpose.msra.mxu1 %v127_v20  ;;  %1568 = vmatpush.xpose.msra.mxu2 %v127_v20 }
  0x27   :  { %1569 = vmatpush.xpose.msra.mxu3 %v127_v20  ;;  %v3378_v20 = vmov 0 }
  0x28   :  { %346 = vperm.xlu1 %1602, %v302_v22  }
  0x29   :  { %343 = vperm.xlu0 %1601, %v301_v21   ;;  %143 = vmatpush.xpose.msra.mxu0 %v126_v23 }
  0x2a   :  { %1570 = vmatpush.xpose.msra.mxu1 %v126_v23  ;;  %1571 = vmatpush.xpose.msra.mxu2 %v126_v23 }
  0x2b   :  { %1572 = vmatpush.xpose.msra.mxu3 %v126_v23  ;;  %349 = vperm.xlu2 %1603, %v303_v24  }
  0x2d   :  { %144 = vmatpush.xpose.msra.mxu0 %v125_v25 }
  0x2e   :  { %1573 = vmatpush.xpose.msra.mxu1 %v125_v25  ;;  %1574 = vmatpush.xpose.msra.mxu2 %v125_v25 }
  0x2f   :  { %1575 = vmatpush.xpose.msra.mxu3 %v125_v25 }
  0x31   :  { %352 = vperm.xlu0 %1601, %v304_v26   ;;  %145 = vmatpush.xpose.msra.mxu0 %v124_v27  ;;  %v3381_v26 = vmov 0 }
  0x32   :  { %1576 = vmatpush.xpose.msra.mxu1 %v124_v27  ;;  %1577 = vmatpush.xpose.msra.mxu2 %v124_v27 }
  0x33   :  { %1578 = vmatpush.xpose.msra.mxu3 %v124_v27  ;;  %v3384_v27 = vmov 0 }
  0x35   :  { %146 = vmatpush.xpose.msra.mxu0 %v123_v28 }
  0x36   :  { %1579 = vmatpush.xpose.msra.mxu1 %v123_v28  ;;  %1580 = vmatpush.xpose.msra.mxu2 %v123_v28 }
  0x37   :  { %1581 = vmatpush.xpose.msra.mxu3 %v123_v28  ;;  %v232_v28 = vadd.s32 112, %v1919_v51 }
  0x39   :  { %147 = vmatpush.xpose.msra.mxu0 %v122_v29 }
  0x3a   :  { %1582 = vmatpush.xpose.msra.mxu1 %v122_v29  ;;  %1583 = vmatpush.xpose.msra.mxu2 %v122_v29 }
  0x3b   :  { %1584 = vmatpush.xpose.msra.mxu3 %v122_v29  ;;  %v3387_v29 = vmov 0 }
  0x3d   :  { %148 = vmatpush.xpose.msra.mxu0 %v121_v30 }
  0x3e   :  { %1585 = vmatpush.xpose.msra.mxu1 %v121_v30  ;;  %1586 = vmatpush.xpose.msra.mxu2 %v121_v30 }
  0x3f   :  { %1587 = vmatpush.xpose.msra.mxu3 %v121_v30  ;;  %v228_v30 = vadd.s32 80, %v1919_v51 }
  0x41   :  { %149 = vmatpush.xpose.msra.mxu0 %v120_v31 }
  0x42   :  { %1588 = vmatpush.xpose.msra.mxu1 %v120_v31  ;;  %1589 = vmatpush.xpose.msra.mxu2 %v120_v31 }
  0x43   :  { %1590 = vmatpush.xpose.msra.mxu3 %v120_v31  ;;  %v230_v31 = vadd.s32 96, %v1919_v51 }
  0x45   :  { %150 = vmatpush.xpose.msra.mxu0 %v119_v32 }
  0x46   :  { %1591 = vmatpush.xpose.msra.mxu1 %v119_v32  ;;  %1592 = vmatpush.xpose.msra.mxu2 %v119_v32 }
  0x47   :  { %1593 = vmatpush.xpose.msra.mxu3 %v119_v32 }
  0x48   :  { %151 = vmatmul.f32.vlgmr.msra.gmra.mxu0 %v103_v33 }
  0x49   :  { %163 = vmatmul.f32.vlgmr.msra.gmra.mxu1 %v107_v34  ;;  %175 = vmatmul.f32.vlgmr.msra.gmra.mxu2 %v111_v35 }
  0x4a   :  { %187 = vmatmul.f32.vlgmr.msra.gmra.mxu3 %v115_v36 }
  0x50   :  { %154 = vmatmul.f32.gmra.mxu0 %v104_v37 }
  0x51   :  { %166 = vmatmul.f32.gmra.mxu1 %v108_v38  ;;  %178 = vmatmul.f32.gmra.mxu2 %v112_v39  ;;  %v3390_v38 = vmov 0  ;;  %v3393_v39 = vmov 0 }
  0x52   :  { %190 = vmatmul.f32.gmra.mxu3 %v116_v40 }
  0x58   :  { %157 = vmatmul.f32.gmra.mxu0 %v105_v41  ;;  %v231_v41 = vadd.s32 104, %v1919_v51 }
  0x59   :  { %169 = vmatmul.f32.gmra.mxu1 %v109_v42  ;;  %181 = vmatmul.f32.gmra.mxu2 %v113_v43  ;;  %v233_v43 = vadd.s32 120, %v1919_v51 }
  0x5a   :  { %193 = vmatmul.f32.gmra.mxu3 %v117_v44 }
  0x60   :  { %160 = vmatmul.f32.gmra.mxu0 %v106_v45 }
  0x61   :  { %172 = vmatmul.f32.gmra.mxu1 %v110_v46  ;;  %184 = vmatmul.f32.gmra.mxu2 %v114_v47 }
  0x62   :  { %196 = vmatmul.f32.gmra.mxu3 %v118_v48 }
  0x65   :  { %v320_v49 = vpop.permute.xlu2 %319 }
  0x6d   :  { %v323_v54 = vpop.permute.xlu2 %322 }
  0x6e   :  { %vm360_vm12 = vcmp.eq.s32.totalorder %v323_v54, %v1930_v56 }
  0x6f   :  { %vm376_vm1 = vmand %vm1953_vm8, %vm360_vm12 }
  0x70   :  { %v2000_v12 = vsel %vm376_vm1, 1.0, %v1789_v2  ;;  %vm263_vm1 = vcmp.ne.s32.totalorder %v224_v11, %v1922_v53 }
  0x75   :  { %v332_v5 = vpop.permute.xlu2 %331 }
  0x7a   :  { %v314_v59 = vpop.permute.xlu1 %313 }
  0x7b   :  { %v308_v60 = vpop.permute.xlu0 %307  ;;  %vm357_vm6 = vcmp.eq.s32.totalorder %v314_v59, %v1930_v56 }
  0x7c   :  { %vm355_vm7 = vcmp.eq.s32.totalorder %v308_v60, %v1930_v56  ;;  %vm373_vm9 = vmand %vm1938_vm4, %vm357_vm6 }
  0x7d   :  { %v1963_v3 = vsel %vm373_vm9, 1.0, %v1789_v2  ;;  %vm371_vm11 = vmand %vm1944_vm5, %vm355_vm7  ;;  %v341_v18 = vpop.permute.xlu2 %340 }
  0x7e   :  { %904 = vadd.xlane.f32.xlu2 %v1963_v3  ;;  %v1970_v4 = vsel %vm371_vm11, 1.0, %v1789_v2  ;;  %vm1992_vm6 = vmand %vm3332_vm0, %vm265_vm15  ;;  %vm359_vm11 = vcmp.eq.s32.totalorder %v320_v49, %v1930_v56  ;;  %vm363_vm15 = vcmp.eq.s32.totalorder %v332_v5, %v1930_v56 }
  0x7f   :  { %900 = vadd.xlane.f32.xlu1 %v1970_v4  ;;  %vm375_vm2 = vmand %vm2004_vm10, %vm359_vm11 }
  0x80   :  { %v2044_v24 = vsel %vm375_vm2, 1.0, %v1789_v2 }
  0x82   :  { %v317_v8 = vpop.permute.xlu1 %316 }
  0x83   :  { %v311_v9 = vpop.permute.xlu0 %310  ;;  %vm358_vm7 = vcmp.eq.s32.totalorder %v317_v8, %v1930_v56 }
  0x84   :  { %vm356_vm9 = vcmp.eq.s32.totalorder %v311_v9, %v1930_v56  ;;  %vm374_vm12 = vmand %vm1976_vm14, %vm358_vm7  ;;  %vm3380_vm14 = vcmp.lt.s32.totalorder %v1922_v53, 16 }
  0x85   :  { %v2012_v14 = vsel %vm374_vm12, 1.0, %v1789_v2  ;;  %vm372_vm13 = vmand %vm1986_vm3, %vm356_vm9  ;;  %vm268_vm12 = vcmp.ne.s32.totalorder %v229_v16, %v1922_v53  ;;  %v350_v33 = vpop.permute.xlu2 %349 }
  0x86   :  { %910 = vadd.xlane.f32.xlu2 %v2000_v12  ;;  %v2019_v15 = vsel %vm372_vm13, 1.0, %v1789_v2  ;;  %vm379_vm7 = vmand %vm1992_vm6, %vm363_vm15  ;;  %vm264_vm13 = vcmp.ne.s32.totalorder %v225_v17, %v1922_v53 }
  0x87   :  { %906 = vadd.xlane.f32.xlu1 %v2012_v14  ;;  %902 = vadd.xlane.f32.xlu0 %v2019_v15  ;;  %vm2033_vm9 = vmand %vm3332_vm0, %vm263_vm1  ;;  %v2040_v23 = vsel %vm379_vm7, 1.0, %v1789_v2  ;;  %vm266_vm1 = vcmp.ne.s32.totalorder %v227_v19, %v1922_v53  ;;  %vm366_vm0 = vcmp.eq.s32.totalorder %v341_v18, %v1930_v56 }
  0x88   :  { %v3379_v20 = vsel %vm2033_vm9, 4294967295, %v3378_v20  ;;  %vm2055_vm4 = vmand %vm3380_vm14, %vm268_vm12 }
  0x89   :  { %v3382_v26 = vsel %vm2055_vm4, 4294967295, %v3381_v26  ;;  %vm3383_vm2 = vmmov %vm3380_vm14 }
  0x8a   :  { %v329_v22 = vpop.permute.xlu1 %328  ;;  %vm3386_vm14 = vmmov %vm3383_vm2 }
  0x8b   :  { %v326_v21 = vpop.permute.xlu0 %325  ;;  %vm362_vm7 = vcmp.eq.s32.totalorder %v329_v22, %v1930_v56  ;;  %vm2072_vm12 = vmand %vm3386_vm14, %vm266_vm1  ;;  %vm267_vm1 = vcmp.ne.s32.totalorder %v228_v30, %v1922_v53  ;;  %vm369_vm14 = vcmp.eq.s32.totalorder %v350_v33, %v1930_v56 }
  0x8c   :  { %vm361_vm11 = vcmp.eq.s32.totalorder %v326_v21, %v1930_v56  ;;  %v3388_v29 = vsel %vm2072_vm12, 4294967295, %v3387_v29 }
  0x8d   :  { %vm377_vm15 = vmand %vm2033_vm9, %vm361_vm11 }
  0x8e   :  { %v2050_v25 = vsel %vm377_vm15, 1.0, %v1789_v2  ;;  %916 = vadd.xlane.f32.xlu2 %v2040_v23  ;;  %vm2063_vm11 = vmand %vm3383_vm2, %vm264_vm13  ;;  %vm271_vm2 = vcmp.ne.s32.totalorder %v232_v28, %v1922_v53 }
  0x8f   :  { %v3385_v27 = vsel %vm2063_vm11, 4294967295, %v3384_v27  ;;  %908 = vadd.xlane.f32.xlu0 %v2044_v24  ;;  %912 = vadd.xlane.f32.xlu1 %v2050_v25  ;;  %vm382_vm13 = vmand %vm2055_vm4, %vm366_vm0 }
  0x90   :  { %vm378_vm15 = vmand %vm2063_vm11, %vm362_vm7  ;;  %v2085_v35 = vsel %vm382_vm13, 1.0, %v1789_v2  ;;  %vm269_vm7 = vcmp.ne.s32.totalorder %v230_v31, %v1922_v53  ;;  %vm3389_vm11 = vcmp.lt.s32.totalorder %v1922_v53, 16 }
  0x91   :  { %v2089_v36 = vsel %vm378_vm15, 1.0, %v1789_v2  ;;  %vm2100_vm4 = vmand %vm3389_vm11, %vm271_vm2 }
  0x92   :  { %v338_v34 = vpop.permute.xlu1 %337  ;;  %v3391_v38 = vsel %vm2100_vm4, 4294967295, %v3390_v38  ;;  %vm3392_vm15 = vmmov %vm3389_vm11 }
  0x93   :  { %v335_v32 = vpop.permute.xlu0 %334  ;;  %vm365_vm13 = vcmp.eq.s32.totalorder %v338_v34, %v1930_v56  ;;  %vm385_vm2 = vmand %vm2100_vm4, %vm369_vm14  ;;  %vm270_vm14 = vcmp.ne.s32.totalorder %v231_v41, %v1922_v53 }
  0x94   :  { %vm364_vm9 = vcmp.eq.s32.totalorder %v335_v32, %v1930_v56  ;;  %v2128_v44 = vsel %vm385_vm2, 1.0, %v1789_v2 }
  0x95   :  { %vm380_vm0 = vmand %vm2072_vm12, %vm364_vm9 }
  0x96   :  { %v2095_v37 = vsel %vm380_vm0, 1.0, %v1789_v2  ;;  %922 = vadd.xlane.f32.xlu2 %v2085_v35  ;;  %vm2108_vm9 = vmand %vm3392_vm15, %vm267_vm1 }
  0x97   :  { %v3394_v39 = vsel %vm2108_vm9, 4294967295, %v3393_v39  ;;  %914 = vadd.xlane.f32.xlu0 %v2089_v36  ;;  %918 = vadd.xlane.f32.xlu1 %v2095_v37  ;;  %vm3395_vm0 = vmmov %vm3389_vm11 }
  0x98   :  { %vm2116_vm11 = vmand %vm3395_vm0, %vm269_vm7 }
  0x99   :  { %vm381_vm12 = vmand %vm2108_vm9, %vm365_vm13  ;;  %vm272_vm13 = vcmp.ne.s32.totalorder %v233_v43, %v1922_v53 }
  0x9a   :  { %v2131_v45 = vsel %vm381_vm12, 1.0, %v1789_v2  ;;  %v347_v46 = vpop.permute.xlu1 %346  ;;  %vm3398_vm12 = vmmov %vm3395_vm0 }
  0x9b   :  { %v344_v42 = vpop.permute.xlu0 %343  ;;  %vm368_vm15 = vcmp.eq.s32.totalorder %v347_v46, %v1930_v56  ;;  %vm2143_vm0 = vmand %vm3398_vm12, %vm270_vm14 }
  0x9c   :  { %vm367_vm1 = vcmp.eq.s32.totalorder %v344_v42, %v1930_v56  ;;  %vm3401_vm2 = vmmov %vm3398_vm12 }
  0x9d   :  { %vm383_vm7 = vmand %vm2116_vm11, %vm367_vm1 }
  0x9e   :  { %v399_v47 = vsel %vm383_vm7, 1.0, %v1789_v2  ;;  %928 = vadd.xlane.f32.xlu2 %v2128_v44  ;;  %vm2149_vm1 = vmand %vm3401_vm2, %vm272_vm13 }
  0x9f   :  { %920 = vadd.xlane.f32.xlu0 %v2131_v45  ;;  %924 = vadd.xlane.f32.xlu1 %v399_v47  ;;  %vm384_vm4 = vmand %vm2143_vm0, %vm368_vm15  ;;  %vm38_vm15 = vcmask 7168  }
  0xa0   :  { %v2162_v52 = vsel %vm384_vm4, 1.0, %v1789_v2  ;;  %vm3404_vm14 = vmmov %vm3401_vm2  ;;  %89 = vst.msk [vmem:[#allocation5 + $0x10] sm:$0xff] %vm38_vm15, %v1789_v2 }
  0xa1   :  { %vm3405_vm4 = vmmov %vm3401_vm2  ;;  %55 = vst.msk [vmem:[#allocation3] sm:$0xff] %vm38_vm15, %v1789_v2 }
  0xa2   :  { %vm3407_vm13 = vmmov %vm3401_vm2  ;;  %56 = vst.msk [vmem:[#allocation3 + $0x8] sm:$0xff] %vm38_vm15, %v1789_v2 }
  0xa3   :  { %v353_v50 = vpop.permute.xlu0 %352  ;;  %57 = vst.msk [vmem:[#allocation3 + $0x10] sm:$0xff] %vm38_vm15, %v1789_v2  ;;  %vm3408_vm12 = vmmov %vm3401_vm2 }
  0xa4   :  { %vm370_vm7 = vcmp.eq.s32.totalorder %v353_v50, %v1930_v56  ;;  %58 = vst.msk [vmem:[#allocation3 + $0x18] sm:$0xff] %vm38_vm15, %v1789_v2 }
  0xa5   :  { %vm386_vm9 = vmand %vm2149_vm1, %vm370_vm7  ;;  %59 = vst.msk [vmem:[#allocation3 + $0x20] sm:$0xff] %vm38_vm15, %v1789_v2 }
  0xa6   :  { %v2159_v51 = vsel %vm386_vm9, 1.0, %v1789_v2  ;;  %vm3406_vm9 = vmmov %vm3401_vm2  ;;  %60 = vst.msk [vmem:[#allocation3 + $0x28] sm:$0xff] %vm38_vm15, %v1789_v2 }
  0xa7   :  { %926 = vadd.xlane.f32.xlu0 %v2162_v52  ;;  %930 = vadd.xlane.f32.xlu1 %v2159_v51  ;;  %61 = vst.msk [vmem:[#allocation3 + $0x30] sm:$0xff] %vm38_vm15, %v1789_v2  ;;  %vm3409_vm7 = vmmov %vm3401_vm2 }
  0xa8   :  { %62 = vst.msk [vmem:[#allocation3 + $0x38] sm:$0xff] %vm38_vm15, %v1789_v2 }
  0xa9   :  { %63 = vst.msk [vmem:[#allocation3 + $0x40] sm:$0xff] %vm38_vm15, %v1789_v2 }
  0xaa   :  { %64 = vst.msk [vmem:[#allocation3 + $0x48] sm:$0xff] %vm38_vm15, %v1789_v2 }
  0xab   :  { %65 = vst.msk [vmem:[#allocation3 + $0x50] sm:$0xff] %vm38_vm15, %v1789_v2 }
  0xac   :  { %66 = vst.msk [vmem:[#allocation3 + $0x58] sm:$0xff] %vm38_vm15, %v1789_v2 }
  0xad   :  { %67 = vst.msk [vmem:[#allocation3 + $0x60] sm:$0xff] %vm38_vm15, %v1789_v2 }
  0xae   :  { %68 = vst.msk [vmem:[#allocation3 + $0x68] sm:$0xff] %vm38_vm15, %v1789_v2 }
  0xaf   :  { %69 = vst.msk [vmem:[#allocation3 + $0x70] sm:$0xff] %vm38_vm15, %v1789_v2 }
  0xb0   :  { %70 = vst.msk [vmem:[#allocation3 + $0x78] sm:$0xff] %vm38_vm15, %v1789_v2 }
  0xb1   :  { %71 = vst.msk [vmem:[#allocation4] sm:$0xff] %vm38_vm15, %v1789_v2 }
  0xb2   :  { %72 = vst.msk [vmem:[#allocation4 + $0x8] sm:$0xff] %vm38_vm15, %v1789_v2 }
  0xb3   :  { %73 = vst.msk [vmem:[#allocation4 + $0x10] sm:$0xff] %vm38_vm15, %v1789_v2 }
  0xb4   :  { %74 = vst.msk [vmem:[#allocation4 + $0x18] sm:$0xff] %vm38_vm15, %v1789_v2 }
  0xb5   :  { %75 = vst.msk [vmem:[#allocation4 + $0x20] sm:$0xff] %vm38_vm15, %v1789_v2 }
  0xb6   :  { %76 = vst.msk [vmem:[#allocation4 + $0x28] sm:$0xff] %vm38_vm15, %v1789_v2 }
  0xb7   :  { %77 = vst.msk [vmem:[#allocation4 + $0x30] sm:$0xff] %vm38_vm15, %v1789_v2 }
  0xb8   :  { %78 = vst.msk [vmem:[#allocation4 + $0x38] sm:$0xff] %vm38_vm15, %v1789_v2 }
  0xb9   :  { %79 = vst.msk [vmem:[#allocation4 + $0x40] sm:$0xff] %vm38_vm15, %v1789_v2 }
  0xba   :  { %80 = vst.msk [vmem:[#allocation4 + $0x48] sm:$0xff] %vm38_vm15, %v1789_v2 }
  0xbb   :  { %81 = vst.msk [vmem:[#allocation4 + $0x50] sm:$0xff] %vm38_vm15, %v1789_v2 }
  0xbc   :  { %82 = vst.msk [vmem:[#allocation4 + $0x58] sm:$0xff] %vm38_vm15, %v1789_v2 }
  0xbd   :  { %83 = vst.msk [vmem:[#allocation4 + $0x60] sm:$0xff] %vm38_vm15, %v1789_v2 }
  0xbe   :  { %84 = vst.msk [vmem:[#allocation4 + $0x68] sm:$0xff] %vm38_vm15, %v1789_v2 }
  0xbf   :  { %85 = vst.msk [vmem:[#allocation4 + $0x70] sm:$0xff] %vm38_vm15, %v1789_v2 }
  0xc0   :  { %86 = vst.msk [vmem:[#allocation4 + $0x78] sm:$0xff] %vm38_vm15, %v1789_v2 }
  0xc1   :  { %87 = vst.msk [vmem:[#allocation5] sm:$0xff] %vm38_vm15, %v1789_v2 }
  0xc2   :  { %88 = vst.msk [vmem:[#allocation5 + $0x8] sm:$0xff] %vm38_vm15, %v1789_v2 }
  0xc3   :  { %90 = vst.msk [vmem:[#allocation5 + $0x18] sm:$0xff] %vm38_vm15, %v1789_v2 }
  0xc4   :  { %91 = vst.msk [vmem:[#allocation5 + $0x20] sm:$0xff] %vm38_vm15, %v1789_v2 }
  0xc5   :  { %v152_v54 = vpop.f32.mrf.mxu0  ;;  %92 = vst.msk [vmem:[#allocation5 + $0x28] sm:$0xff] %vm38_vm15, %v1789_v2 }
  0xc6   :  { %v2166_v55 = vmul.f32 14.285714, %v152_v54  ;;  %v164_v59 = vpop.f32.mrf.mxu1  ;;  %93 = vst.msk [vmem:[#allocation5 + $0x30] sm:$0xff] %vm38_vm15, %v1789_v2 }
  0xc7   :  { %v2173_v60 = vmul.f32 14.285714, %v164_v59  ;;  %94 = vst.msk [vmem:[#allocation5 + $0x38] sm:$0xff] %vm38_vm15, %v1789_v2 }
  0xc8   :  { %v403_v56 = vsel %vm3404_vm14, %v2166_v55, -1e+30  ;;  %v804_v57 = vmul.f32 %v1970_v4, %v2166_v55  ;;  %vm3410_vm14 = vmmov %vm3401_vm2  ;;  %95 = vst.msk [vmem:[#allocation5 + $0x40] sm:$0xff] %vm38_vm15, %v1789_v2 }
  0xc9   :  { %419 = vmax.xlane.f32.xlu1 %v403_v56  ;;  %v407_v8 = vsel %vm3405_vm4, %v2173_v60, -1e+30  ;;  %v808_v17 = vmul.f32 %v2044_v24, %v2173_v60  ;;  %vm3411_vm4 = vmmov %vm3401_vm2  ;;  %96 = vst.msk [vmem:[#allocation5 + $0x48] sm:$0xff] %vm38_vm15, %v1789_v2 }
  0xca   :  { %820 = vadd.xlane.f32.xlu2 %v804_v57  ;;  %97 = vst.msk [vmem:[#allocation5 + $0x50] sm:$0xff] %vm38_vm15, %v1789_v2 }
  0xcb   :  { %98 = vst.msk [vmem:[#allocation5 + $0x58] sm:$0xff] %vm38_vm15, %v1789_v2 }
  0xcc   :  { %v176_v62 = vpop.f32.mrf.mxu2  ;;  %99 = vst.msk [vmem:[#allocation5 + $0x60] sm:$0xff] %vm38_vm15, %v1789_v2 }
  0xcd   :  { %v188_v0 = vpop.f32.mrf.mxu3  ;;  %v2175_v1 = vmul.f32 14.285714, %v176_v62  ;;  %v155_v18 = vpop.f32.mrf.mxu0  ;;  %100 = vst.msk [vmem:[#allocation5 + $0x68] sm:$0xff] %vm38_vm15, %v1789_v2 }
  0xce   :  { %v2177_v5 = vmul.f32 14.285714, %v188_v0  ;;  %v167_v16 = vpop.f32.mrf.mxu1  ;;  %v2213_v22 = vmul.f32 14.285714, %v155_v18  ;;  %v884_v18 = vld [vmem:[#allocation5] sm:$0xff]  ;;  %101 = vst.msk [vmem:[#allocation5 + $0x70] sm:$0xff] %vm38_vm15, %v1789_v2 }
  0xcf   :  { %v411_v4 = vsel %vm3407_vm13, %v2175_v1, -1e+30  ;;  %v812_v11 = vmul.f32 %v2040_v23, %v2175_v1  ;;  %v2209_v21 = vmul.f32 14.285714, %v167_v16  ;;  %vm3413_vm13 = vmmov %vm3401_vm2  ;;  %102 = vst.msk [vmem:[#allocation5 + $0x78] sm:$0xff] %vm38_vm15, %v1789_v2 }
  0xd0   :  { %v415_v9 = vsel %vm3406_vm9, %v2177_v5, -1e+30  ;;  %v816_v19 = vmul.f32 %v399_v47, %v2177_v5  ;;  %v805_v24 = vmul.f32 %v2019_v15, %v2213_v22  ;;  %v404_v28 = vsel %vm3408_vm12, %v2213_v22, -1e+30  ;;  %v886_v47 = vld [vmem:[#allocation5 + $0x10] sm:$0xff]  ;;  %vm3412_vm9 = vmmov %vm3401_vm2 }
  0xd1   :  { %443 = vmax.xlane.f32.xlu0 %v415_v9  ;;  %427 = vmax.xlane.f32.xlu1 %v407_v8  ;;  %v809_v23 = vmul.f32 %v2000_v12, %v2209_v21  ;;  %v408_v34 = vsel %vm3410_vm14, %v2209_v21, -1e+30  ;;  %vm3414_vm12 = vmmov %vm3401_vm2 }
  0xd2   :  { %435 = vmax.xlane.f32.xlu2 %v411_v4  ;;  %vm3416_vm14 = vmmov %vm3401_vm2 }
  0xd4   :  { %v179_v30 = vpop.f32.mrf.mxu2 }
  0xd5   :  { %v191_v31 = vpop.f32.mrf.mxu3  ;;  %v2238_v12 = vmul.f32 14.285714, %v179_v30  ;;  %v158_v41 = vpop.f32.mrf.mxu0  ;;  %v885_v30 = vld [vmem:[#allocation5 + $0x8] sm:$0xff] }
  0xd6   :  { %v2242_v15 = vmul.f32 14.285714, %v191_v31  ;;  %v2267_v42 = vmul.f32 14.285714, %v158_v41  ;;  %v170_v50 = vpop.f32.mrf.mxu1 }
  0xd7   :  { %v412_v32 = vsel %vm3401_vm2, %v2238_v12, -1e+30  ;;  %v813_v54 = vmul.f32 %v2095_v37, %v2238_v12  ;;  %v2292_v62 = vmul.f32 14.285714, %v170_v50 }
  0xd8   :  { %v416_v33 = vsel %vm3409_vm7, %v2242_v15, -1e+30  ;;  %v405_v43 = vsel %vm3411_vm4, %v2267_v42, -1e+30  ;;  %v817_v46 = vmul.f32 %v2162_v52, %v2242_v15  ;;  %vm3415_vm7 = vmmov %vm3401_vm2 }
  0xd9   :  { %836 = vadd.xlane.f32.xlu0 %v812_v11  ;;  %828 = vadd.xlane.f32.xlu1 %v808_v17  ;;  %v409_v37 = vsel %vm3412_vm9, %v2292_v62, -1e+30  ;;  %v810_v9 = vmul.f32 %v2050_v25, %v2292_v62  ;;  %vm3417_vm4 = vmmov %vm3401_vm2  ;;  %vm3439_vm9 = vnez %v3371_v6 }
  0xda   :  { %844 = vadd.xlane.f32.xlu2 %v816_v19  ;;  %v887_v19 = vld [vmem:[#allocation5 + $0x18] sm:$0xff] }
  0xdc   :  { %v182_v56 = vpop.f32.mrf.mxu2 }
  0xdd   :  { %v2296_v0 = vmul.f32 14.285714, %v182_v56  ;;  %v194_v4 = vpop.f32.mrf.mxu3  ;;  %v888_v56 = vld [vmem:[#allocation5 + $0x20] sm:$0xff] }
  0xde   :  { %v2323_v25 = vmul.f32 14.285714, %v194_v4  ;;  %v895_v4 = vld [vmem:[#allocation5 + $0x58] sm:$0xff] }
  0xdf   :  { %v413_v8 = vsel %vm3413_vm13, %v2296_v0, -1e+30  ;;  %v814_v31 = vmul.f32 %v2131_v45, %v2296_v0 }
  0xe0   :  { %v818_v2 = vmul.f32 %v2128_v44, %v2323_v25 }
  0xe1   :  { %830 = vadd.xlane.f32.xlu0 %v809_v23  ;;  %822 = vadd.xlane.f32.xlu1 %v805_v24  ;;  %v806_v23 = vmul.f32 %v1963_v3, %v2267_v42  ;;  %v173_v3 = vpop.f32.mrf.mxu1 }
  0xe2   :  { %421 = vmax.xlane.f32.xlu2 %v404_v28  ;;  %v889_v28 = vld [vmem:[#allocation5 + $0x28] sm:$0xff] }
  0xe9   :  { %437 = vmax.xlane.f32.xlu0 %v412_v32  ;;  %445 = vmax.xlane.f32.xlu1 %v416_v33  ;;  %v417_v32 = vsel %vm3414_vm12, %v2323_v25, -1e+30  ;;  %v161_v33 = vpop.f32.mrf.mxu0 }
  0xea   :  { %429 = vmax.xlane.f32.xlu2 %v408_v34 }
  0xf1   :  { %423 = vmax.xlane.f32.xlu0 %v405_v43  ;;  %846 = vadd.xlane.f32.xlu1 %v817_v46  ;;  %v905_v57 = vpop.xlane.xlu2 %904  ;;  %v890_v46 = vld [vmem:[#allocation5 + $0x30] sm:$0xff] }
  0xf2   :  { %v934_v59 = vadd.f32 %v905_v57, %v886_v47  ;;  %v901_v52 = vpop.xlane.xlu1 %900  ;;  %838 = vadd.xlane.f32.xlu2 %v813_v54  ;;  %v892_v47 = vld [vmem:[#allocation5 + $0x40] sm:$0xff] }
  0xf3   :  { %v932_v24 = vadd.f32 %v901_v52, %v884_v18  ;;  %v891_v18 = vld [vmem:[#allocation5 + $0x38] sm:$0xff] }
  0xf4   :  { %950 = vst.msk [vmem:[#allocation5 + $0x10] sm:$0xff] %vm38_vm15, %v934_v59  ;;  %v2345_v59 = vmul.f32 14.285714, %v173_v3 }
  0xf5   :  { %948 = vst.msk [vmem:[#allocation5] sm:$0xff] %vm38_vm15, %v932_v24 }
  0xf6   :  { %v811_v3 = vmul.f32 %v2089_v36, %v2345_v59 }
  0xf9   :  { %431 = vmax.xlane.f32.xlu0 %v409_v37  ;;  %439 = vmax.xlane.f32.xlu1 %v413_v8  ;;  %v911_v11 = vpop.xlane.xlu2 %910  ;;  %v2348_v37 = vmul.f32 14.285714, %v161_v33 }
  0xfa   :  { %v907_v16 = vpop.xlane.xlu1 %906  ;;  %v903_v17 = vpop.xlane.xlu0 %902  ;;  %832 = vadd.xlane.f32.xlu2 %v810_v9  ;;  %v937_v34 = vadd.f32 %v911_v11, %v889_v28  ;;  %v410_v9 = vsel %vm3401_vm2, %v2345_v59, -1e+30  ;;  %v1790_v28 = vmov -1e+30  }
  0xfb   :  { %v935_v41 = vadd.f32 %v907_v16, %v887_v19  ;;  %v933_v45 = vadd.f32 %v903_v17, %v885_v30  ;;  %v406_v11 = vsel %vm3415_vm7, %v2348_v37, -1e+30  ;;  %v197_v16 = vpop.f32.mrf.mxu3  ;;  %v893_v17 = vld [vmem:[#allocation5 + $0x48] sm:$0xff]  ;;  %39 = vst.msk [vmem:[#allocation2] sm:$0xff] %vm38_vm15, %v1790_v28 }
  0xfc   :  { %953 = vst.msk [vmem:[#allocation5 + $0x28] sm:$0xff] %vm38_vm15, %v937_v34  ;;  %v2364_v30 = vmul.f32 14.285714, %v197_v16  ;;  %v185_v34 = vpop.f32.mrf.mxu2 }
  0xfd   :  { %951 = vst.msk [vmem:[#allocation5 + $0x18] sm:$0xff] %vm38_vm15, %v935_v41  ;;  %v898_v41 = vld [vmem:[#allocation5 + $0x70] sm:$0xff] }
  0xfe   :  { %949 = vst.msk [vmem:[#allocation5 + $0x8] sm:$0xff] %vm38_vm15, %v933_v45  ;;  %v418_v33 = vsel %vm3416_vm14, %v2364_v30, -1e+30  ;;  %v807_v45 = vmul.f32 %v2012_v14, %v2348_v37  ;;  %v819_v53 = vmul.f32 %v2159_v51, %v2364_v30 }
  0xff   :  { %40 = vst.msk [vmem:[#allocation2 + $0x8] sm:$0xff] %vm38_vm15, %v1790_v28 }
 0x100   :  { %41 = vst.msk [vmem:[#allocation2 + $0x10] sm:$0xff] %vm38_vm15, %v1790_v28 }
 0x101   :  { %824 = vadd.xlane.f32.xlu0 %v806_v23  ;;  %840 = vadd.xlane.f32.xlu1 %v814_v31  ;;  %v917_v43 = vpop.xlane.xlu2 %916  ;;  %42 = vst.msk [vmem:[#allocation2 + $0x18] sm:$0xff] %vm38_vm15, %v1790_v28 }
 0x102   :  { %v913_v50 = vpop.xlane.xlu1 %912  ;;  %v909_v54 = vpop.xlane.xlu0 %908  ;;  %447 = vmax.xlane.f32.xlu2 %v417_v32  ;;  %v940_v57 = vadd.f32 %v917_v43, %v892_v47  ;;  %v896_v43 = vld [vmem:[#allocation5 + $0x60] sm:$0xff]  ;;  %43 = vst.msk [vmem:[#allocation2 + $0x20] sm:$0xff] %vm38_vm15, %v1790_v28 }
 0x103   :  { %v938_v52 = vadd.f32 %v913_v50, %v890_v46  ;;  %v936_v8 = vadd.f32 %v909_v54, %v888_v56  ;;  %v894_v46 = vld [vmem:[#allocation5 + $0x50] sm:$0xff]  ;;  %v2380_v50 = vmul.f32 14.285714, %v185_v34  ;;  %44 = vst.msk [vmem:[#allocation2 + $0x28] sm:$0xff] %vm38_vm15, %v1790_v28 }
 0x104   :  { %956 = vst.msk [vmem:[#allocation5 + $0x40] sm:$0xff] %vm38_vm15, %v940_v57 }
 0x105   :  { %954 = vst.msk [vmem:[#allocation5 + $0x30] sm:$0xff] %vm38_vm15, %v938_v52  ;;  %v815_v14 = vmul.f32 %v2085_v35, %v2380_v50 }
 0x106   :  { %952 = vst.msk [vmem:[#allocation5 + $0x20] sm:$0xff] %vm38_vm15, %v936_v8  ;;  %v414_v8 = vsel %vm3417_vm4, %v2380_v50, -1e+30 }
 0x107   :  { %45 = vst.msk [vmem:[#allocation2 + $0x30] sm:$0xff] %vm38_vm15, %v1790_v28 }
 0x108   :  { %46 = vst.msk [vmem:[#allocation2 + $0x38] sm:$0xff] %vm38_vm15, %v1790_v28 }
 0x109   :  { %848 = vadd.xlane.f32.xlu0 %v818_v2  ;;  %433 = vmax.xlane.f32.xlu1 %v410_v9  ;;  %v923_v44 = vpop.xlane.xlu2 %922  ;;  %v899_v2 = vld [vmem:[#allocation5 + $0x78] sm:$0xff]  ;;  %v897_v9 = vld [vmem:[#allocation5 + $0x68] sm:$0xff]  ;;  %47 = vst.msk [vmem:[#allocation2 + $0x40] sm:$0xff] %vm38_vm15, %v1790_v28 }
 0x10a   :  { %v943_v19 = vadd.f32 %v923_v44, %v895_v4  ;;  %v919_v23 = vpop.xlane.xlu1 %918  ;;  %v915_v24 = vpop.xlane.xlu0 %914  ;;  %425 = vmax.xlane.f32.xlu2 %v406_v11  ;;  %48 = vst.msk [vmem:[#allocation2 + $0x48] sm:$0xff] %vm38_vm15, %v1790_v28 }
 0x10b   :  { %v941_v31 = vadd.f32 %v919_v23, %v893_v17  ;;  %v939_v32 = vadd.f32 %v915_v24, %v891_v18  ;;  %49 = vst.msk [vmem:[#allocation2 + $0x50] sm:$0xff] %vm38_vm15, %v1790_v28  ;;  %v2405_v17 = vld [vmem:[#allocation2] sm:$0xff] }
 0x10c   :  { %959 = vst.msk [vmem:[#allocation5 + $0x58] sm:$0xff] %vm38_vm15, %v943_v19  ;;  %v788_v18 = vld [vmem:[#allocation4] sm:$0xff] }
 0x10d   :  { %957 = vst.msk [vmem:[#allocation5 + $0x48] sm:$0xff] %vm38_vm15, %v941_v31 }
 0x10e   :  { %955 = vst.msk [vmem:[#allocation5 + $0x38] sm:$0xff] %vm38_vm15, %v939_v32 }
 0x10f   :  { %50 = vst.msk [vmem:[#allocation2 + $0x58] sm:$0xff] %vm38_vm15, %v1790_v28 }
 0x110   :  { %51 = vst.msk [vmem:[#allocation2 + $0x60] sm:$0xff] %vm38_vm15, %v1790_v28 }
 0x111   :  { %449 = vmax.xlane.f32.xlu0 %v418_v33  ;;  %834 = vadd.xlane.f32.xlu1 %v811_v3  ;;  %v929_v47 = vpop.xlane.xlu2 %928  ;;  %52 = vst.msk [vmem:[#allocation2 + $0x68] sm:$0xff] %vm38_vm15, %v1790_v28  ;;  %v2420_v33 = vld [vmem:[#allocation2 + $0x40] sm:$0xff] }
 0x112   :  { %v946_v54 = vadd.f32 %v929_v47, %v898_v41  ;;  %v925_v56 = vpop.xlane.xlu1 %924  ;;  %v921_v36 = vpop.xlane.xlu0 %920  ;;  %826 = vadd.xlane.f32.xlu2 %v807_v45  ;;  %53 = vst.msk [vmem:[#allocation2 + $0x70] sm:$0xff] %vm38_vm15, %v1790_v28 }
 0x113   :  { %v944_v57 = vadd.f32 %v925_v56, %v896_v43  ;;  %v942_v52 = vadd.f32 %v921_v36, %v894_v46  ;;  %54 = vst.msk [vmem:[#allocation2 + $0x78] sm:$0xff] %vm38_vm15, %v1790_v28  ;;  %v2418_v28 = vld [vmem:[#allocation2 + $0x20] sm:$0xff] }
 0x114   :  { %962 = vst.msk [vmem:[#allocation5 + $0x70] sm:$0xff] %vm38_vm15, %v946_v54  ;;  %v796_v56 = vld [vmem:[#allocation4 + $0x40] sm:$0xff] }
 0x115   :  { %960 = vst.msk [vmem:[#allocation5 + $0x60] sm:$0xff] %vm38_vm15, %v944_v57  ;;  %v792_v36 = vld [vmem:[#allocation4 + $0x20] sm:$0xff] }
 0x116   :  { %958 = vst.msk [vmem:[#allocation5 + $0x50] sm:$0xff] %vm38_vm15, %v942_v52  ;;  %v800_v52 = vld [vmem:[#allocation4 + $0x60] sm:$0xff] }
 0x117   :  { %v2416_v51 = vld [vmem:[#allocation2 + $0x60] sm:$0xff] }
 0x119   :  { %842 = vadd.xlane.f32.xlu0 %v815_v14 }
 0x11a   :  { %v931_v4 = vpop.xlane.xlu1 %930  ;;  %v927_v11 = vpop.xlane.xlu0 %926  ;;  %441 = vmax.xlane.f32.xlu2 %v414_v8 }
 0x11b   :  { %v947_v16 = vadd.f32 %v931_v4, %v899_v2  ;;  %v945_v35 = vadd.f32 %v927_v11, %v897_v9  ;;  %v793_v11 = vld [vmem:[#allocation4 + $0x28] sm:$0xff] }
 0x11d   :  { %963 = vst.msk [vmem:[#allocation5 + $0x78] sm:$0xff] %vm38_vm15, %v947_v16  ;;  %v789_v16 = vld [vmem:[#allocation4 + $0x8] sm:$0xff] }
 0x11e   :  { %961 = vst.msk [vmem:[#allocation5 + $0x68] sm:$0xff] %vm38_vm15, %v945_v35 }
 0x122   :  { %850 = vadd.xlane.f32.xlu2 %v819_v53  ;;  %v2449_v53 = vld [vmem:[#allocation2 + $0x8] sm:$0xff] }
 0x13c   :  { %v420_v44 = vpop.xlane.xlu1 %419 }
 0x13d   :  { %v2408_v19 = vmax.f32 %v2405_v17, %v420_v44  ;;  %v821_v23 = vpop.xlane.xlu2 %820 }
 0x13e   :  { %v852_v24 = vadd.f32 %v821_v23, %v788_v18 }
 0x13f   :  { %772 = vst.msk [vmem:[#allocation2] sm:$0xff] %vm38_vm15, %v2408_v19  ;;  %533 = vperm.xlu1 %1602, %v2408_v19  }
 0x140   :  { %868 = vst.msk [vmem:[#allocation4] sm:$0xff] %vm38_vm15, %v852_v24 }
 0x144   :  { %v444_v32 = vpop.xlane.xlu0 %443  ;;  %v428_v3 = vpop.xlane.xlu1 %427 }
 0x145   :  { %v2423_v34 = vmax.f32 %v2416_v51, %v444_v32  ;;  %v2426_v41 = vmax.f32 %v2418_v28, %v428_v3  ;;  %v436_v43 = vpop.xlane.xlu2 %435  ;;  %v2503_v3 = vld [vmem:[#allocation2 + $0x30] sm:$0xff] }
 0x146   :  { %v2433_v45 = vmax.f32 %v2420_v33, %v436_v43  ;;  %v2461_v43 = vld [vmem:[#allocation2 + $0x48] sm:$0xff]  ;;  %3418 = vst [vmem:[#allocation12_spill] sm:$0xff] %v2503_v3 }
 0x147   :  { %784 = vst.msk [vmem:[#allocation2 + $0x60] sm:$0xff] %vm38_vm15, %v2423_v34  ;;  %553 = vperm.xlu0 %1601, %v2426_v41   ;;  %593 = vperm.xlu1 %1602, %v2423_v34  }
 0x148   :  { %776 = vst.msk [vmem:[#allocation2 + $0x20] sm:$0xff] %vm38_vm15, %v2426_v41  ;;  %573 = vperm.xlu2 %1603, %v2433_v45   ;;  %v3440_v6 = vsub.f32 %v2420_v33, %v2433_v45  ;;  %v2660_v33 = vld [vmem:[#allocation5 + $0x60] sm:$0xff] }
 0x149   :  { %780 = vst.msk [vmem:[#allocation2 + $0x40] sm:$0xff] %vm38_vm15, %v2433_v45  ;;  %vm3359_vm14 = vcmp.gt.f32.partialorder %v2660_v33, 0.0 }
 0x14c   :  { %v837_v57 = vpop.xlane.xlu0 %836  ;;  %v829_v8 = vpop.xlane.xlu1 %828 }
 0x14d   :  { %v860_v14 = vadd.f32 %v837_v57, %v796_v56  ;;  %v856_v2 = vadd.f32 %v829_v8, %v792_v36  ;;  %v845_v9 = vpop.xlane.xlu2 %844  ;;  %v2463_v56 = vld [vmem:[#allocation2 + $0x68] sm:$0xff] }
 0x14e   :  { %v864_v4 = vadd.f32 %v845_v9, %v800_v52  ;;  %v2465_v57 = vld [vmem:[#allocation2 + $0x28] sm:$0xff] }
 0x14f   :  { %876 = vst.msk [vmem:[#allocation4 + $0x40] sm:$0xff] %vm38_vm15, %v860_v14 }
 0x150   :  { %872 = vst.msk [vmem:[#allocation4 + $0x20] sm:$0xff] %vm38_vm15, %v856_v2 }
 0x151   :  { %880 = vst.msk [vmem:[#allocation4 + $0x60] sm:$0xff] %vm38_vm15, %v864_v4 }
 0x154   :  { %v831_v35 = vpop.xlane.xlu0 %830  ;;  %v823_v44 = vpop.xlane.xlu1 %822 }
 0x155   :  { %v857_v18 = vadd.f32 %v831_v35, %v793_v11  ;;  %v853_v23 = vadd.f32 %v823_v44, %v789_v16  ;;  %v422_v24 = vpop.xlane.xlu2 %421  ;;  %v2491_v35 = vld [vmem:[#allocation2 + $0x10] sm:$0xff] }
 0x156   :  { %v2453_v32 = vmax.f32 %v2449_v53, %v422_v24 }
 0x157   :  { %873 = vst.msk [vmem:[#allocation4 + $0x28] sm:$0xff] %vm38_vm15, %v857_v18  ;;  %v801_v18 = vld [vmem:[#allocation4 + $0x68] sm:$0xff] }
 0x158   :  { %869 = vst.msk [vmem:[#allocation4 + $0x8] sm:$0xff] %vm38_vm15, %v853_v23  ;;  %538 = vperm.xlu2 %1603, %v2453_v32   ;;  %v797_v23 = vld [vmem:[#allocation4 + $0x48] sm:$0xff] }
 0x159   :  { %773 = vst.msk [vmem:[#allocation2 + $0x8] sm:$0xff] %vm38_vm15, %v2453_v32 }
 0x15c   :  { %v438_v36 = vpop.xlane.xlu0 %437  ;;  %v446_v14 = vpop.xlane.xlu1 %445 }
 0x15d   :  { %v2468_v52 = vmax.f32 %v2461_v43, %v438_v36  ;;  %v2471_v8 = vmax.f32 %v2463_v56, %v446_v14  ;;  %v430_v2 = vpop.xlane.xlu2 %429 }
 0x15e   :  { %v2478_v4 = vmax.f32 %v2465_v57, %v430_v2 }
 0x15f   :  { %781 = vst.msk [vmem:[#allocation2 + $0x48] sm:$0xff] %vm38_vm15, %v2468_v52  ;;  %578 = vperm.xlu1 %1602, %v2468_v52   ;;  %598 = vperm.xlu0 %1601, %v2471_v8  }
 0x160   :  { %785 = vst.msk [vmem:[#allocation2 + $0x68] sm:$0xff] %vm38_vm15, %v2471_v8  ;;  %558 = vperm.xlu2 %1603, %v2478_v4  }
 0x161   :  { %777 = vst.msk [vmem:[#allocation2 + $0x28] sm:$0xff] %vm38_vm15, %v2478_v4 }
 0x164   :  { %v424_v44 = vpop.xlane.xlu0 %423  ;;  %v847_v36 = vpop.xlane.xlu1 %846 }
 0x165   :  { %v2494_v24 = vmax.f32 %v2491_v35, %v424_v44  ;;  %v865_v14 = vadd.f32 %v847_v36, %v801_v18  ;;  %v839_v2 = vpop.xlane.xlu2 %838  ;;  %v2505_v44 = vld [vmem:[#allocation2 + $0x50] sm:$0xff] }
 0x166   :  { %v861_v9 = vadd.f32 %v839_v2, %v797_v23  ;;  %3419 = vst [vmem:[#allocation13_spill] sm:$0xff] %v2505_v44  ;;  %v794_v18 = vld [vmem:[#allocation4 + $0x30] sm:$0xff] }
 0x167   :  { %774 = vst.msk [vmem:[#allocation2 + $0x10] sm:$0xff] %vm38_vm15, %v2494_v24  ;;  %543 = vperm.xlu0 %1601, %v2494_v24  }
 0x168   :  { %881 = vst.msk [vmem:[#allocation4 + $0x68] sm:$0xff] %vm38_vm15, %v865_v14  ;;  %v2524_v14 = vld [vmem:[#allocation2 + $0x70] sm:$0xff] }
 0x169   :  { %877 = vst.msk [vmem:[#allocation4 + $0x48] sm:$0xff] %vm38_vm15, %v861_v9 }
 0x16a   :  { %3422 = vst [vmem:[#allocation16_spill] sm:$0xff] %v2524_v14 }
 0x16c   :  { %v432_v16 = vpop.xlane.xlu0 %431  ;;  %v440_v11 = vpop.xlane.xlu1 %439 }
 0x16d   :  { %v2508_v36 = vmax.f32 %v2503_v3, %v432_v16  ;;  %v2511_v46 = vmax.f32 %v2505_v44, %v440_v11  ;;  %v833_v23 = vpop.xlane.xlu2 %832  ;;  %v790_v11 = vld [vmem:[#allocation4 + $0x10] sm:$0xff] }
 0x16e   :  { %v858_v9 = vadd.f32 %v833_v23, %v794_v18  ;;  %v798_v16 = vld [vmem:[#allocation4 + $0x50] sm:$0xff] }
 0x16f   :  { %3420 = vst [vmem:[#allocation14_spill] sm:$0xff] %v2508_v36  ;;  %563 = vperm.xlu1 %1602, %v2508_v36   ;;  %583 = vperm.xlu0 %1601, %v2511_v46  }
 0x170   :  { %3421 = vst [vmem:[#allocation15_spill] sm:$0xff] %v2511_v46 }
 0x171   :  { %778 = vst.msk [vmem:[#allocation2 + $0x30] sm:$0xff] %vm38_vm15, %v2508_v36 }
 0x172   :  { %782 = vst.msk [vmem:[#allocation2 + $0x50] sm:$0xff] %vm38_vm15, %v2511_v46 }
 0x173   :  { %874 = vst.msk [vmem:[#allocation4 + $0x30] sm:$0xff] %vm38_vm15, %v858_v9  ;;  %v802_v9 = vld [vmem:[#allocation4 + $0x70] sm:$0xff] }
 0x174   :  { %v825_v47 = vpop.xlane.xlu0 %824  ;;  %v841_v54 = vpop.xlane.xlu1 %840 }
 0x175   :  { %v854_v31 = vadd.f32 %v825_v47, %v790_v11  ;;  %v862_v18 = vadd.f32 %v841_v54, %v798_v16  ;;  %v448_v23 = vpop.xlane.xlu2 %447  ;;  %v2536_v47 = vld [vmem:[#allocation2 + $0x38] sm:$0xff] }
 0x176   :  { %v2528_v2 = vmax.f32 %v2524_v14, %v448_v23  ;;  %3424 = vst [vmem:[#allocation18_spill] sm:$0xff] %v2536_v47  ;;  %v2538_v11 = vld [vmem:[#allocation2 + $0x18] sm:$0xff] }
 0x177   :  { %870 = vst.msk [vmem:[#allocation4 + $0x10] sm:$0xff] %vm38_vm15, %v854_v31 }
 0x178   :  { %3423 = vst [vmem:[#allocation17_spill] sm:$0xff] %v2528_v2  ;;  %603 = vperm.xlu2 %1603, %v2528_v2  }
 0x179   :  { %878 = vst.msk [vmem:[#allocation4 + $0x50] sm:$0xff] %vm38_vm15, %v862_v18 }
 0x17a   :  { %786 = vst.msk [vmem:[#allocation2 + $0x70] sm:$0xff] %vm38_vm15, %v2528_v2 }
 0x17b   :  { %3425 = vst [vmem:[#allocation19_spill] sm:$0xff] %v2538_v11 }
 0x17c   :  { %v849_v54 = vpop.xlane.xlu0 %848  ;;  %v434_v16 = vpop.xlane.xlu1 %433 }
 0x17d   :  { %v866_v31 = vadd.f32 %v849_v54, %v802_v9  ;;  %v2541_v23 = vmax.f32 %v2536_v47, %v434_v16  ;;  %v426_v18 = vpop.xlane.xlu2 %425  ;;  %v2557_v54 = vld [vmem:[#allocation2 + $0x78] sm:$0xff] }
 0x17e   :  { %v2545_v46 = vmax.f32 %v2538_v11, %v426_v18  ;;  %3428 = vst [vmem:[#allocation22_spill] sm:$0xff] %v2557_v54  ;;  %v791_v18 = vld [vmem:[#allocation4 + $0x18] sm:$0xff] }
 0x17f   :  { %3426 = vst [vmem:[#allocation20_spill] sm:$0xff] %v2541_v23  ;;  %568 = vperm.xlu0 %1601, %v2541_v23  }
 0x180   :  { %882 = vst.msk [vmem:[#allocation4 + $0x70] sm:$0xff] %vm38_vm15, %v866_v31  ;;  %548 = vperm.xlu1 %1602, %v2545_v46   ;;  %v795_v31 = vld [vmem:[#allocation4 + $0x38] sm:$0xff] }
 0x181   :  { %3427 = vst [vmem:[#allocation21_spill] sm:$0xff] %v2545_v46 }
 0x182   :  { %779 = vst.msk [vmem:[#allocation2 + $0x38] sm:$0xff] %vm38_vm15, %v2541_v23 }
 0x183   :  { %775 = vst.msk [vmem:[#allocation2 + $0x18] sm:$0xff] %vm38_vm15, %v2545_v46  ;;  %v799_v46 = vld [vmem:[#allocation4 + $0x58] sm:$0xff] }
 0x184   :  { %v450_v16 = vpop.xlane.xlu0 %449  ;;  %v835_v47 = vpop.xlane.xlu1 %834 }
 0x185   :  { %v2560_v2 = vmax.f32 %v2557_v54, %v450_v16  ;;  %v859_v14 = vadd.f32 %v835_v47, %v795_v31  ;;  %v827_v44 = vpop.xlane.xlu2 %826  ;;  %v2569_v16 = vld [vmem:[#allocation2 + $0x58] sm:$0xff] }
 0x186   :  { %v855_v9 = vadd.f32 %v827_v44, %v791_v18  ;;  %3430 = vst [vmem:[#allocation24_spill] sm:$0xff] %v2569_v16 }
 0x187   :  { %3429 = vst [vmem:[#allocation23_spill] sm:$0xff] %v2560_v2 }
 0x188   :  { %787 = vst.msk [vmem:[#allocation2 + $0x78] sm:$0xff] %vm38_vm15, %v2560_v2  ;;  %608 = vperm.xlu1 %1602, %v2560_v2  }
 0x189   :  { %875 = vst.msk [vmem:[#allocation4 + $0x38] sm:$0xff] %vm38_vm15, %v859_v14  ;;  %v803_v14 = vld [vmem:[#allocation4 + $0x78] sm:$0xff] }
 0x18a   :  { %871 = vst.msk [vmem:[#allocation4 + $0x18] sm:$0xff] %vm38_vm15, %v855_v9 }
 0x18c   :  { %v843_v11 = vpop.xlane.xlu0 %842 }
 0x18d   :  { %v863_v36 = vadd.f32 %v843_v11, %v799_v46  ;;  %v442_v47 = vpop.xlane.xlu2 %441 }
 0x18e   :  { %v2573_v31 = vmax.f32 %v2569_v16, %v442_v47 }
 0x18f   :  { %879 = vst.msk [vmem:[#allocation4 + $0x58] sm:$0xff] %vm38_vm15, %v863_v36 }
 0x190   :  { %3431 = vst [vmem:[#allocation25_spill] sm:$0xff] %v2573_v31  ;;  %588 = vperm.xlu2 %1603, %v2573_v31  }
 0x191   :  { %783 = vst.msk [vmem:[#allocation2 + $0x58] sm:$0xff] %vm38_vm15, %v2573_v31 }
 0x195   :  { %v851_v9 = vpop.xlane.xlu2 %850 }
 0x196   :  { %v867_v18 = vadd.f32 %v851_v9, %v803_v14 }
 0x198   :  { %883 = vst.msk [vmem:[#allocation4 + $0x78] sm:$0xff] %vm38_vm15, %v867_v18 }
 0x1a2   :  { %v574_v46 = vpop.permute.xlu2 %573 }
 0x1a3   :  { %v619_v11 = vsub.f32 %v2175_v1, %v574_v46 }
 0x1a5   :  { %v643_v36 = vmul.f32 1.442695, %v619_v11 }
 0x1a7   :  { %1605 = vpow2.f32 %v643_v36 }
 0x1ad   :  { %v1606_v47 = vpop.eup %1605 }
 0x1ae   :  { %v667_v44 = vsel %vm1992_vm6, %v1606_v47, 0.0  ;;  %vm3435_vm6 = vnez %v3394_v39 }
 0x1b1   :  { %v534_v23 = vpop.permute.xlu1 %533 }
 0x1b2   :  { %v611_v2 = vsub.f32 %v2166_v55, %v534_v23  ;;  %v539_v54 = vpop.permute.xlu2 %538  ;;  %723 = vadd.xlane.f32.xlu1 %v667_v44 }
 0x1b3   :  { %v612_v36 = vsub.f32 %v2213_v22, %v539_v54 }
 0x1b4   :  { %v627_v31 = vmul.f32 1.442695, %v611_v2 }
 0x1b5   :  { %v629_v2 = vmul.f32 1.442695, %v612_v36 }
 0x1b6   :  { %1607 = vpow2.f32 %v627_v31 }
 0x1b9   :  { %v554_v16 = vpop.permute.xlu0 %553  ;;  %v594_v14 = vpop.permute.xlu1 %593 }
 0x1ba   :  { %v615_v9 = vsub.f32 %v2173_v60, %v554_v16  ;;  %v623_v18 = vsub.f32 %v2177_v5, %v594_v14  ;;  %v559_v1 = vpop.permute.xlu2 %558 }
 0x1bb   :  { %v616_v46 = vsub.f32 %v2209_v21, %v559_v1 }
 0x1bc   :  { %v1608_v11 = vpop.eup %1607  ;;  %v635_v10 = vmul.f32 1.442695, %v615_v9  ;;  %v651_v47 = vmul.f32 1.442695, %v623_v18 }
 0x1bd   :  { %v637_v3 = vmul.f32 1.442695, %v616_v46  ;;  %v659_v55 = vsel %vm1944_vm5, %v1608_v11, 0.0  ;;  %vm3432_vm5 = vnez %v3388_v29 }
 0x1be   :  { %1609 = vpow2.f32 %v635_v10  ;;  %707 = vadd.xlane.f32.xlu0 %v659_v55 }
 0x1bf   :  { %1611 = vpow2.f32 %v651_v47 }
 0x1c0   :  { %1613 = vpow2.f32 %v637_v3 }
 0x1c1   :  { %1615 = vpow2.f32 %v629_v2 }
 0x1c4   :  { %v1610_v60 = vpop.eup %1609 }
 0x1c5   :  { %v1612_v5 = vpop.eup %1611  ;;  %v663_v21 = vsel %vm2004_vm10, %v1610_v60, 0.0  ;;  %vm3436_vm10 = vnez %v3391_v38 }
 0x1c6   :  { %v1614_v23 = vpop.eup %1613  ;;  %715 = vadd.xlane.f32.xlu2 %v663_v21  ;;  %v671_v22 = vsel %vm2116_vm11, %v1612_v5, 0.0  ;;  %vm3437_vm11 = vnez %v3382_v26 }
 0x1c7   :  { %731 = vadd.xlane.f32.xlu0 %v671_v22  ;;  %v664_v61 = vsel %vm1953_vm8, %v1614_v23, 0.0  ;;  %v1616_v54 = vpop.eup %1615  ;;  %vm3433_vm8 = vnez %v3365_v58 }
 0x1c8   :  { %717 = vadd.xlane.f32.xlu1 %v664_v61  ;;  %v660_v3 = vsel %vm1986_vm3, %v1616_v54, 0.0  ;;  %vm3434_vm3 = vnez %v3379_v20 }
 0x1ce   :  { %709 = vadd.xlane.f32.xlu2 %v660_v3 }
 0x1d1   :  { %v579_v16 = vpop.permute.xlu1 %578  ;;  %v599_v13 = vpop.permute.xlu0 %598 }
 0x1d2   :  { %v620_v31 = vsub.f32 %v2238_v12, %v579_v16  ;;  %v624_v44 = vsub.f32 %v2242_v15, %v599_v13  ;;  %v604_v40 = vpop.permute.xlu2 %603 }
 0x1d3   :  { %v625_v7 = vsub.f32 %v2323_v25, %v604_v40 }
 0x1d4   :  { %v645_v14 = vmul.f32 1.442695, %v620_v31  ;;  %v653_v9 = vmul.f32 1.442695, %v624_v44 }
 0x1d5   :  { %v655_v15 = vmul.f32 1.442695, %v625_v7  ;;  %v2651_v7 = vld [vmem:[#allocation5 + $0x40] sm:$0xff] }
 0x1d6   :  { %1617 = vpow2.f32 %v645_v14  ;;  %vm3361_vm2 = vcmp.gt.f32.partialorder %v2651_v7, 0.0 }
 0x1d7   :  { %1619 = vpow2.f32 %v653_v9 }
 0x1d9   :  { %v544_v18 = vpop.permute.xlu0 %543 }
 0x1da   :  { %v613_v63 = vsub.f32 %v2267_v42, %v544_v18 }
 0x1dc   :  { %v1618_v1 = vpop.eup %1617  ;;  %v631_v11 = vmul.f32 1.442695, %v613_v63  ;;  %v2629_v63 = vld [vmem:[#allocation5 + $0x10] sm:$0xff] }
 0x1dd   :  { %v1620_v46 = vpop.eup %1619  ;;  %v668_v36 = vsel %vm3432_vm5, %v1618_v1, 0.0  ;;  %vm3355_vm13 = vcmp.gt.f32.partialorder %v2629_v63, 0.0  ;;  %v515_v1 = vmul.f32 1.442695, %v3440_v6 }
 0x1de   :  { %725 = vadd.xlane.f32.xlu0 %v668_v36  ;;  %v672_v12 = vsel %vm2143_vm0, %v1620_v46, 0.0  ;;  %1621 = vpow2.f32 %v631_v11  ;;  %vm3438_vm0 = vnez %v3385_v27  ;;  %v2637_v27 = vsel %vm3355_vm13, %v2629_v63, 1.0  ;;  %v2649_v46 = vld [vmem:[#allocation5 + $0x8] sm:$0xff]  ;;  %v2656_v36 = vld [vmem:[#allocation5 + $0x20] sm:$0xff] }
 0x1df   :  { %733 = vadd.xlane.f32.xlu2 %v672_v12  ;;  %1623 = vpow2.f32 %v655_v15  ;;  %vm3360_vm7 = vcmp.gt.f32.partialorder %v2656_v36, 0.0 }
 0x1e1   :  { %v564_v10 = vpop.permute.xlu1 %563  ;;  %v584_v55 = vpop.permute.xlu0 %583 }
 0x1e2   :  { %v617_v47 = vsub.f32 %v2292_v62, %v564_v10  ;;  %v621_v42 = vsub.f32 %v2296_v0, %v584_v55  ;;  %v683_v10 = vld [vmem:[#allocation3 + $0x40] sm:$0xff]  ;;  %v2675_v55 = vld [vmem:[#allocation5 + $0x28] sm:$0xff] }
 0x1e3   :  { %vm3358_vm4 = vcmp.gt.f32.partialorder %v2675_v55, 0.0 }
 0x1e4   :  { %v639_v2 = vmul.f32 1.442695, %v617_v47  ;;  %v1622_v60 = vpop.eup %1621  ;;  %v647_v25 = vmul.f32 1.442695, %v621_v42  ;;  %v2673_v47 = vsel %vm3361_vm2, %v2651_v7, 1.0 }
 0x1e5   :  { %v661_v29 = vsel %vm3433_vm8, %v1622_v60, 0.0  ;;  %v1624_v48 = vpop.eup %1623  ;;  %v1208_v6 = vand.u32 2147483647, %v2673_v47 }
 0x1e6   :  { %1625 = vpow2.f32 %v639_v2  ;;  %711 = vadd.xlane.f32.xlu1 %v661_v29  ;;  %v673_v58 = vsel %vm3436_vm10, %v1624_v48, 0.0  ;;  %v3441_v2 = vsub.f32 %v2405_v17, %v2408_v19  ;;  %v2696_v17 = vsel %vm3359_vm14, %v2660_v33, 1.0 }
 0x1e7   :  { %1627 = vpow2.f32 %v647_v25  ;;  %v2686_v25 = vsel %vm3360_vm7, %v2656_v36, 1.0  ;;  %vm1264_vm14 = vweird.f32 %v2696_v17 }
 0x1e8   :  { %v499_v60 = vmul.f32 1.442695, %v3441_v2 }
 0x1ea   :  { %v589_v5 = vpop.permute.xlu2 %588 }
 0x1eb   :  { %v622_v23 = vsub.f32 %v2380_v50, %v589_v5 }
 0x1ec   :  { %v1626_v21 = vpop.eup %1625 }
 0x1ed   :  { %v1628_v22 = vpop.eup %1627  ;;  %v665_v62 = vsel %vm3434_vm3, %v1626_v21, 0.0  ;;  %v649_v0 = vmul.f32 1.442695, %v622_v23  ;;  %v2702_v23 = vsel %vm3358_vm4, %v2675_v55, 1.0 }
 0x1ee   :  { %719 = vadd.xlane.f32.xlu0 %v665_v62  ;;  %v669_v61 = vsel %vm3435_vm6, %v1628_v22, 0.0  ;;  %735 = vadd.xlane.f32.xlu1 %v673_v58  ;;  %v1120_v22 = vand.u32 2147483648, %v2637_v27  ;;  %vm1204_vm6 = vweird.f32 %v2673_v47 }
 0x1ef   :  { %727 = vadd.xlane.f32.xlu2 %v669_v61  ;;  %1629 = vpow2.f32 %v649_v0 }
 0x1f1   :  { %v569_v54 = vpop.permute.xlu0 %568 }
 0x1f2   :  { %v618_v3 = vsub.f32 %v2345_v59, %v569_v54  ;;  %v549_v16 = vpop.permute.xlu1 %548 }
 0x1f3   :  { %v614_v50 = vsub.f32 %v2348_v37, %v549_v16  ;;  %v3442_v16 = vsub.f32 %v2418_v28, %v2426_v41  ;;  %v3444_v41 = vsub.f32 %v2465_v57, %v2478_v4  ;;  %v1210_v57 = vand.u32 2147483648, %v2673_v47 }
 0x1f4   :  { %v641_v31 = vmul.f32 1.442695, %v618_v3 }
 0x1f5   :  { %v1630_v20 = vpop.eup %1629  ;;  %v633_v13 = vmul.f32 1.442695, %v614_v50  ;;  %v507_v50 = vmul.f32 1.442695, %v3442_v16 }
 0x1f6   :  { %1631 = vpow2.f32 %v641_v31  ;;  %v670_v39 = vsel %vm3437_vm11, %v1630_v20, 0.0  ;;  %v2719_v20 = vor.u32 1.1754944e-38, %v1120_v22  ;;  %v1148_v22 = vand.u32 2147483647, %v2686_v25 }
 0x1f7   :  { %1633 = vpow2.f32 %v633_v13  ;;  %729 = vadd.xlane.f32.xlu1 %v670_v39  ;;  %v3443_v39 = vsub.f32 %v2416_v51, %v2423_v34  ;;  %v2742_v34 = vld [vmem:[#allocation5 + $0x48] sm:$0xff] }
 0x1f8   :  { %vm3356_vm11 = vcmp.gt.f32.partialorder %v2742_v34, 0.0 }
 0x1fa   :  { %v609_v38 = vpop.permute.xlu1 %608 }
 0x1fb   :  { %v626_v44 = vsub.f32 %v2364_v30, %v609_v38  ;;  %v2632_v30 = vld [vmem:[#allocation5] sm:$0xff]  ;;  %v523_v38 = vmul.f32 1.442695, %v3443_v39  ;;  %v2785_v39 = vor.u32 1.1754944e-38, %v1210_v57 }
 0x1fc   :  { %v1632_v14 = vpop.eup %1631  ;;  %vm1031_vm12 = vcmp.gt.f32.partialorder %v2632_v30, 0.0 }
 0x1fd   :  { %v1634_v9 = vpop.eup %1633  ;;  %v657_v40 = vmul.f32 1.442695, %v626_v44  ;;  %v666_v59 = vsel %vm3438_vm0, %v1632_v14, 0.0  ;;  %v2647_v49 = vsel %vm1031_vm12, %v2632_v30, 1.0  ;;  %v3472_v30 = vsub.f32 %v2491_v35, %v2494_v24  ;;  %v688_v24 = vld [vmem:[#allocation3 + $0x68] sm:$0xff] }
 0x1fe   :  { %721 = vadd.xlane.f32.xlu2 %v666_v59  ;;  %v662_v37 = vsel %vm3439_vm9, %v1634_v9, 0.0  ;;  %v1088_v58 = vand.u32 2147483647, %v2647_v49  ;;  %v1090_v3 = vand.u32 2147483648, %v2647_v49  ;;  %vm1084_vm5 = vweird.f32 %v2647_v49 }
 0x1ff   :  { %1635 = vpow2.f32 %v657_v40  ;;  %713 = vadd.xlane.f32.xlu0 %v662_v37  ;;  %v509_v9 = vmul.f32 1.442695, %v3444_v41  ;;  %v675_v40 = vld [vmem:[#allocation3] sm:$0xff]  ;;  %vm1144_vm9 = vweird.f32 %v2686_v25 }
 0x200   :  { %1637 = vrcp.f32 %v2637_v27  ;;  %vm2736_vm8 = vcmp.eq.f32.partialorder %v1088_v58, 8.507059e+37 }
 0x201   :  { %1639 = vpow2.f32 %v515_v1 }
 0x202   :  { %1641 = vrcp.f32 %v2647_v49 }
 0x205   :  { %v1636_v18 = vpop.eup %1635 }
 0x206   :  { %v674_v26 = vsel %vm2149_vm1, %v1636_v18, 0.0  ;;  %v2654_v11 = vpop.eup %1637  ;;  %vm3357_vm1 = vcmp.gt.f32.partialorder %v2649_v46, 0.0 }
 0x207   :  { %737 = vadd.xlane.f32.xlu0 %v674_v26  ;;  %v2666_v45 = vsel %vm3357_vm1, %v2649_v46, 1.0  ;;  %v1110_v12 = vmul.f32 %v2654_v11, %v2637_v27  ;;  %v1640_v15 = vpop.eup %1639  ;;  %v1091_v26 = vor.u32 1.1754944e-38, %v1090_v3 }
 0x208   :  { %v2677_v42 = vpop.eup %1641  ;;  %1643 = vrcp.f32 %v2666_v45  ;;  %v699_v29 = vmul.f32 %v1640_v15, %v683_v10  ;;  %v1103_v4 = vand.u32 2147483647, %v2666_v45  ;;  %vm1099_vm10 = vweird.f32 %v2666_v45 }
 0x209   :  { %1645 = vrcp.f32 %v2673_v47  ;;  %v1111_v48 = vsub.f32 1.0, %v1110_v12  ;;  %v1080_v21 = vmul.f32 %v2677_v42, %v2647_v49  ;;  %vm1085_vm3 = vweird.f32 %v2677_v42 }
 0x20a   :  { %1647 = vrcp.f32 %v2686_v25  ;;  %v1150_v12 = vand.u32 2147483648, %v2686_v25  ;;  %vm2765_vm0 = vmor %vm1084_vm5, %vm1085_vm3  ;;  %v2780_v49 = vsel %vm3356_vm11, %v2742_v34, 1.0  ;;  %vm1159_vm5 = vweird.f32 %v2702_v23 }
 0x20b   :  { %1649 = vpow2.f32 %v499_v60  ;;  %v1112_v62 = vmul.f32 %v2654_v11, %v1111_v48  ;;  %v1081_v61 = vsub.f32 1.0, %v1080_v21  ;;  %vm2793_vm3 = vcmp.eq.f32.partialorder %v1208_v6, 8.507059e+37 }
 0x20c   :  { %1651 = vrcp.f32 %v2696_v17  ;;  %vm2808_vm1 = vcmp.eq.f32.partialorder %v1103_v4, 8.507059e+37 }
 0x20d   :  { %1653 = vrcp.f32 %v2702_v23  ;;  %v2730_v14 = vadd.f32 %v2654_v11, %v1112_v62  ;;  %v1082_v59 = vmul.f32 %v2677_v42, %v1081_v61  ;;  %v1105_v62 = vand.u32 2147483648, %v2666_v45 }
 0x20e   :  { %v2708_v0 = vpop.eup %1643  ;;  %1655 = vpow2.f32 %v507_v50  ;;  %v3449_v61 = vsub.f32 %v2449_v53, %v2453_v32  ;;  %v2783_v50 = vor.u32 1.1754944e-38, %v1150_v12  ;;  %v679_v32 = vld [vmem:[#allocation3 + $0x20] sm:$0xff]  ;;  %v680_v12 = vld [vmem:[#allocation3 + $0x28] sm:$0xff] }
 0x20f   :  { %v2711_v54 = vpop.eup %1645  ;;  %v1095_v44 = vmul.f32 %v2708_v0, %v2666_v45  ;;  %1657 = vpow2.f32 %v523_v38  ;;  %vm1100_vm13 = vweird.f32 %v2708_v0  ;;  %v2799_v57 = vor.u32 1.1754944e-38, %v1105_v62 }
 0x210   :  { %v2721_v13 = vpop.eup %1647  ;;  %v1200_v51 = vmul.f32 %v2711_v54, %v2673_v47  ;;  %1659 = vpow2.f32 %v509_v9  ;;  %v501_v58 = vmul.f32 1.442695, %v3449_v61  ;;  %vm1205_vm11 = vweird.f32 %v2711_v54  ;;  %vm2834_vm2 = vmor %vm1099_vm10, %vm1100_vm13 }
 0x211   :  { %v1650_v28 = vpop.eup %1649  ;;  %v1140_v1 = vmul.f32 %v2721_v13, %v2686_v25  ;;  %v1096_v2 = vsub.f32 1.0, %v1095_v44  ;;  %1661 = vrcp.f32 %v2780_v49  ;;  %vm1145_vm4 = vweird.f32 %v2721_v13 }
 0x212   :  { %v2744_v18 = vpop.eup %1651  ;;  %v691_v10 = vmul.f32 %v1650_v28, %v675_v40  ;;  %1663 = vpow2.f32 %v501_v58  ;;  %v1268_v45 = vand.u32 2147483647, %v2696_v17 }
 0x213   :  { %v2754_v15 = vpop.eup %1653  ;;  %v1260_v48 = vmul.f32 %v2744_v18, %v2696_v17  ;;  %v1141_v3 = vsub.f32 1.0, %v1140_v1  ;;  %v1097_v38 = vmul.f32 %v2708_v0, %v1096_v2  ;;  %v1163_v1 = vand.u32 2147483647, %v2702_v23 }
 0x214   :  { %v1155_v16 = vmul.f32 %v2754_v15, %v2702_v23  ;;  %v1656_v53 = vpop.eup %1655  ;;  %vm1160_vm7 = vweird.f32 %v2754_v15  ;;  %vm1265_vm13 = vweird.f32 %v2744_v18 }
 0x215   :  { %v1261_v28 = vsub.f32 1.0, %v1260_v48  ;;  %v1658_v40 = vpop.eup %1657  ;;  %v1142_v6 = vmul.f32 %v2721_v13, %v1141_v3  ;;  %v695_v48 = vmul.f32 %v1656_v53, %v679_v32  ;;  %vm2874_vm10 = vmor %vm1159_vm5, %vm1160_vm7  ;;  %vm2895_vm7 = vcmp.eq.f32.partialorder %v1268_v45, 8.507059e+37 }
 0x216   :  { %vm1219_vm5 = vweird.f32 %v2780_v49 }
 0x217   :  { %v1262_v61 = vmul.f32 %v2744_v18, %v1261_v28  ;;  %v1075_v28 = vld [vmem:[#allocation4 + $0x60] sm:$0xff] }
 0x225   :  { %v724_v5 = vpop.xlane.xlu1 %723 }
 0x226   :  { %v747_v19 = vadd.f32 %v724_v5, %v699_v29  ;;  %v1083_v29 = vadd.f32 %v2677_v42, %v1082_v59  ;;  %v1201_v5 = vsub.f32 1.0, %v1200_v51  ;;  %v687_v59 = vld [vmem:[#allocation3 + $0x60] sm:$0xff] }
 0x227   :  { %v703_v62 = vmul.f32 %v1658_v40, %v687_v59 }
 0x228   :  { %764 = vst.msk [vmem:[#allocation3 + $0x40] sm:$0xff] %vm38_vm15, %v747_v19  ;;  %v1087_v44 = vsel %vm2765_vm0, %v2677_v42, %v1083_v29  ;;  %v1202_v41 = vmul.f32 %v2711_v54, %v1201_v5  ;;  %v1660_v42 = vpop.eup %1659  ;;  %vm2804_vm0 = vcmp.eq.f32.partialorder %v1148_v22, 8.507059e+37  ;;  %v1165_v29 = vand.u32 2147483648, %v2702_v23  ;;  %v1063_v5 = vld [vmem:[#allocation4] sm:$0xff] }
 0x229   :  { %v1098_v19 = vadd.f32 %v2708_v0, %v1097_v38  ;;  %v696_v31 = vmul.f32 %v1660_v42, %v680_v12  ;;  %v1270_v42 = vand.u32 2147483648, %v2696_v17  ;;  %v1067_v17 = vld [vmem:[#allocation4 + $0x20] sm:$0xff] }
 0x22a   :  { %v1203_v58 = vadd.f32 %v2711_v54, %v1202_v41  ;;  %v2839_v41 = vpop.eup %1661 }
 0x22b   :  { %v1664_v12 = vpop.eup %1663 }
 0x22f   :  { %v991_v51 = vld [vmem:[#allocation3 + $0x40] sm:$0xff] }
 0x230   :  { %v1007_v4 = vadd.f32 1.6e-11, %v991_v51 }
 0x231   :  { %v708_v60 = vpop.xlane.xlu0 %707 }
 0x232   :  { %v739_v21 = vadd.f32 %v708_v60, %v691_v10  ;;  %v1156_v60 = vsub.f32 1.0, %v1155_v16  ;;  %1665 = vlog2.f32 %v1007_v4 }
 0x234   :  { %756 = vst.msk [vmem:[#allocation3] sm:$0xff] %vm38_vm15, %v739_v21  ;;  %v1092_v21 = vsel %vm2736_vm8, %v1091_v26, %v1087_v44  ;;  %vm2824_vm8 = vmor %vm1204_vm6, %vm1205_vm11  ;;  %v1143_v44 = vadd.f32 %v2721_v13, %v1142_v6  ;;  %v1157_v47 = vmul.f32 %v2754_v15, %v1156_v60  ;;  %v676_v6 = vld [vmem:[#allocation3 + $0x8] sm:$0xff]  ;;  %v1263_v60 = vadd.f32 %v2744_v18, %v1262_v61 }
 0x235   :  { %v1093_v32 = vmul.f32 %v1092_v21, %v1063_v5  ;;  %vm2846_vm6 = vmor %vm1144_vm9, %vm1145_vm4  ;;  %v1207_v25 = vsel %vm2824_vm8, %v2711_v54, %v1203_v58  ;;  %v1102_v5 = vsel %vm2834_vm2, %v2708_v0, %v1098_v19  ;;  %vm2862_vm4 = vcmp.eq.f32.partialorder %v1163_v1, 8.507059e+37  ;;  %v2882_v1 = vld [vmem:[#allocation5 + $0x50] sm:$0xff]  ;;  %v1064_v58 = vld [vmem:[#allocation4 + $0x8] sm:$0xff] }
 0x236   :  { %v1147_v54 = vsel %vm2846_vm6, %v2721_v13, %v1143_v44  ;;  %v1158_v61 = vadd.f32 %v2754_v15, %v1157_v47  ;;  %v2880_v0 = vmul.f32 %v2839_v41, %v2780_v49  ;;  %v692_v19 = vmul.f32 %v1664_v12, %v676_v6  ;;  %vm2891_vm2 = vmor %vm1264_vm14, %vm1265_vm13  ;;  %v2929_v12 = vld [vmem:[#allocation5 + $0x38] sm:$0xff]  ;;  %v971_v6 = vld [vmem:[#allocation2 + $0x20] sm:$0xff] }
 0x237   :  { %v1152_v9 = vsel %vm2804_vm0, %v2783_v50, %v1147_v54  ;;  %vm1041_vm14 = vcmp.gt.f32.partialorder %v2882_v1, 0.0  ;;  %vm1115_vm9 = vweird.f32 %v2654_v11  ;;  %v1068_v54 = vld [vmem:[#allocation4 + $0x28] sm:$0xff]  ;;  %vm3473_vm8 = vcmp.gt.f32.partialorder %v2651_v7, 0.0  ;;  %v3476_v7 = vld [vmem:[#allocation12_spill] sm:$0xff] }
 0x238   :  { %v1216_v47 = vsub.f32 1.0, %v2880_v0  ;;  %v1153_v10 = vmul.f32 %v1152_v9, %v1067_v17  ;;  %v1225_v9 = vand.u32 2147483648, %v2780_v49  ;;  %vm3482_vm13 = vcmp.gt.f32.partialorder %v2656_v36, 0.0 }
 0x239   :  { %v716_v22 = vpop.xlane.xlu2 %715 }
 0x23a   :  { %v743_v3 = vadd.f32 %v716_v22, %v695_v48  ;;  %v732_v16 = vpop.xlane.xlu0 %731  ;;  %v1071_v48 = vld [vmem:[#allocation4 + $0x40] sm:$0xff]  ;;  %v1166_v22 = vor.u32 1.1754944e-38, %v1165_v29  ;;  %v3466_v29 = vsub.f32 %v2461_v43, %v2468_v52  ;;  %v3471_v43 = vsub.f32 %v2463_v56, %v2471_v8  ;;  %v1666_v56 = vpop.eup %1665 }
 0x23b   :  { %v751_v26 = vadd.f32 %v732_v16, %v703_v62  ;;  %v718_v38 = vpop.xlane.xlu1 %717  ;;  %v983_v53 = vld [vmem:[#allocation3] sm:$0xff]  ;;  %v2902_v16 = vld [vmem:[#allocation5 + $0x30] sm:$0xff]  ;;  %v1217_v21 = vmul.f32 %v2839_v41, %v1216_v47 }
 0x23c   :  { %760 = vst.msk [vmem:[#allocation3 + $0x20] sm:$0xff] %vm38_vm15, %v743_v3  ;;  %v744_v40 = vadd.f32 %v718_v38, %v696_v31  ;;  %v999_v59 = vadd.f32 1.6e-11, %v983_v53  ;;  %v967_v31 = vld [vmem:[#allocation2] sm:$0xff]  ;;  %v517_v13 = vmul.f32 1.442695, %v3466_v29  ;;  %v1212_v3 = vsel %vm2793_vm3, %v2785_v39, %v1207_v25 }
 0x23d   :  { %768 = vst.msk [vmem:[#allocation3 + $0x60] sm:$0xff] %vm38_vm15, %v751_v26  ;;  %v1319_v62 = vsub.f32 %v1093_v32, %v967_v31  ;;  %v525_v52 = vmul.f32 1.442695, %v3471_v43  ;;  %v1267_v26 = vsel %vm2891_vm2, %v2744_v18, %v1263_v60  ;;  %v1271_v38 = vor.u32 1.1754944e-38, %v1270_v42 }
 0x23e   :  { %761 = vst.msk [vmem:[#allocation3 + $0x28] sm:$0xff] %vm38_vm15, %v744_v40  ;;  %1667 = vlog2.f32 %v999_v59  ;;  %v1213_v53 = vmul.f32 %v1212_v3, %v1071_v48  ;;  %v2916_v39 = vsel %vm2808_vm1, %v2799_v57, %v1102_v5  ;;  %v1162_v18 = vsel %vm2874_vm10, %v2754_v15, %v1158_v61  ;;  %v975_v59 = vld [vmem:[#allocation2 + $0x40] sm:$0xff]  ;;  %v2932_v48 = vld [vmem:[#allocation5 + $0x18] sm:$0xff]  ;;  %v972_v3 = vld [vmem:[#allocation2 + $0x28] sm:$0xff] }
 0x23f   :  { %v1335_v8 = vadd.f32 1e-12, %v1319_v62  ;;  %vm1037_vm11 = vcmp.gt.f32.partialorder %v2902_v16, 0.0  ;;  %1669 = vpow2.f32 %v517_v13  ;;  %v1272_v40 = vsel %vm2895_vm7, %v1271_v38, %v1267_v26  ;;  %v684_v38 = vld [vmem:[#allocation3 + $0x48] sm:$0xff] }
 0x240   :  { %1671 = vpow2.f32 %v525_v52  ;;  %v1327_v42 = vsub.f32 %v1213_v53, %v975_v59  ;;  %vm1114_vm1 = vweird.f32 %v2637_v27  ;;  %v1273_v60 = vmul.f32 %v1272_v40, %v1075_v28 }
 0x241   :  { %v710_v37 = vpop.xlane.xlu2 %709  ;;  %v1223_v31 = vand.u32 2147483647, %v2780_v49  ;;  %v1368_v62 = vmul.f32 0.6931472, %v1666_v56  ;;  %v2937_v61 = vsel %vm1041_vm14, %v2882_v1, 1.0  ;;  %v1167_v4 = vsel %vm2862_vm4, %v1166_v22, %v1162_v18  ;;  %vm2976_vm6 = vmor %vm1114_vm1, %vm1115_vm9  ;;  %v3039_v49 = vld [vmem:[#allocation5 + $0x68] sm:$0xff] }
 0x242   :  { %v740_v32 = vadd.f32 %v710_v37, %v692_v19  ;;  %v2945_v0 = vsel %vm1037_vm11, %v2902_v16, 1.0  ;;  %vm1038_vm3 = vcmp.gt.f32.partialorder %v2929_v12, 0.0  ;;  %v1323_v13 = vsub.f32 %v1153_v10, %v971_v6  ;;  %v979_v19 = vld [vmem:[#allocation2 + $0x60] sm:$0xff]  ;;  %v1077_v16 = vld [vmem:[#allocation4 + $0x70] sm:$0xff] }
 0x243   :  { %v987_v44 = vld [vmem:[#allocation3 + $0x20] sm:$0xff]  ;;  %v1343_v23 = vadd.f32 1e-12, %v1327_v42  ;;  %vm1034_vm0 = vcmp.gt.f32.partialorder %v2932_v48, 0.0  ;;  %v1331_v52 = vsub.f32 %v1273_v60, %v979_v19  ;;  %v1168_v37 = vmul.f32 %v1167_v4, %v1068_v54 }
 0x244   :  { %v1668_v50 = vpop.eup %1667  ;;  %757 = vst.msk [vmem:[#allocation3 + $0x8] sm:$0xff] %vm38_vm15, %v740_v32  ;;  %v1003_v57 = vadd.f32 1.6e-11, %v987_v44  ;;  %v995_v2 = vld [vmem:[#allocation3 + $0x60] sm:$0xff]  ;;  %v503_v26 = vmul.f32 1.442695, %v3472_v30  ;;  %v1108_v44 = vmul.f32 %v2916_v39, %v1064_v58  ;;  %v2965_v10 = vadd.f32 %v2839_v41, %v1217_v21 }
 0x245   :  { %v1352_v51 = vmul.f32 0.6931472, %v1668_v50  ;;  %v1011_v45 = vadd.f32 1.6e-11, %v995_v2  ;;  %v988_v15 = vld [vmem:[#allocation3 + $0x28] sm:$0xff]  ;;  %v1670_v22 = vpop.eup %1669  ;;  %v1391_v53 = vsub.f32 %v1343_v23, %v1368_v62  ;;  %v1324_v28 = vsub.f32 %v1168_v37, %v972_v3  ;;  %v3480_v58 = vld [vmem:[#allocation15_spill] sm:$0xff] }
 0x246   :  { %1673 = vlog2.f32 %v1003_v57  ;;  %v1004_v25 = vadd.f32 1.6e-11, %v988_v15  ;;  %v1672_v17 = vpop.eup %1671  ;;  %v2962_v18 = vsel %vm1038_vm3, %v2929_v12, 1.0  ;;  %v1339_v47 = vadd.f32 1e-12, %v1323_v13  ;;  %v968_v57 = vld [vmem:[#allocation2 + $0x8] sm:$0xff] }
 0x247   :  { %v1383_v5 = vsub.f32 %v1335_v8, %v1352_v51  ;;  %1675 = vlog2.f32 %v1011_v45  ;;  %v700_v40 = vmul.f32 %v1670_v22, %v684_v38  ;;  %v1347_v59 = vadd.f32 1e-12, %v1331_v52  ;;  %v3479_v23 = vld [vmem:[#allocation13_spill] sm:$0xff] }
 0x248   :  { %1677 = vlog2.f32 %v1004_v25  ;;  %v1407_v45 = vsel %vm3473_vm8, %v1391_v53, 0.0  ;;  %v704_v60 = vmul.f32 %v1672_v17, %v688_v24  ;;  %v1340_v62 = vadd.f32 1e-12, %v1324_v28 }
 0x249   :  { %v1399_v29 = vsel %vm1031_vm12, %v1383_v5, 0.0  ;;  %1679 = vrcp.f32 %v2937_v61  ;;  %vm1220_vm12 = vweird.f32 %v2839_v41  ;;  %v1320_v5 = vsub.f32 %v1108_v44, %v968_v57 }
 0x24a   :  { %v1415_v43 = vmul.f32 -1.0, %v1399_v29  ;;  %1681 = vrcp.f32 %v2945_v0  ;;  %v3477_v29 = vld [vmem:[#allocation14_spill] sm:$0xff]  ;;  %v3481_v3 = vsub.f32 %v3479_v23, %v3480_v58  ;;  %v3483_v37 = vand.u32 2147483647, %v2637_v27  ;;  %vm3006_vm2 = vmor %vm1219_vm5, %vm1220_vm12  ;;  %v3048_v23 = vld [vmem:[#allocation5 + $0x58] sm:$0xff] }
 0x24b   :  { %v984_v32 = vld [vmem:[#allocation3 + $0x8] sm:$0xff]  ;;  %v3478_v13 = vsub.f32 %v3476_v7, %v3477_v29  ;;  %vm3486_vm10 = vcmp.gt.f32.partialorder %v2660_v33, 0.0  ;;  %v1423_v53 = vmul.f32 -1.0, %v1407_v45  ;;  %v1117_v33 = vsel %vm2976_vm6, %v2654_v11, %v2730_v14 }
 0x24c   :  { %v1674_v56 = vpop.eup %1673  ;;  %1433 = vperm.xlu0 %1601, %v1415_v43   ;;  %v1000_v8 = vadd.f32 1.6e-11, %v984_v32  ;;  %v519_v21 = vmul.f32 1.442695, %v3481_v3  ;;  %vm2992_vm4 = vcmp.eq.f32.partialorder %v3483_v37, 8.507059e+37  ;;  %v3487_v32 = vld [vmem:[#allocation16_spill] sm:$0xff]  ;;  %vm1174_vm12 = vweird.f32 %v2945_v0 }
 0x24d   :  { %v1676_v35 = vpop.eup %1675  ;;  %v1360_v50 = vmul.f32 0.6931472, %v1674_v56  ;;  %v511_v19 = vmul.f32 1.442695, %v3478_v13  ;;  %v3488_v56 = vld [vmem:[#allocation17_spill] sm:$0xff]  ;;  %v1226_v24 = vor.u32 1.1754944e-38, %v1225_v9  ;;  %v1222_v9 = vsel %vm3006_vm2, %v2839_v41, %v2965_v10 }
 0x24e   :  { %v1678_v2 = vpop.eup %1677  ;;  %v1376_v39 = vmul.f32 0.6931472, %v1676_v35  ;;  %1683 = vlog2.f32 %v1000_v8  ;;  %v3489_v8 = vsub.f32 %v3487_v32, %v3488_v56  ;;  %v1336_v11 = vadd.f32 1e-12, %v1320_v5  ;;  %v1072_v45 = vld [vmem:[#allocation4 + $0x48] sm:$0xff] }
 0x24f   :  { %1685 = vpow2.f32 %v503_v26  ;;  %v1387_v51 = vsub.f32 %v1339_v47, %v1360_v50  ;;  %v1362_v42 = vmul.f32 0.6931472, %v1678_v2  ;;  %v2970_v15 = vpop.eup %1679  ;;  %v1240_v47 = vand.u32 2147483648, %v2937_v61  ;;  %v677_v2 = vld [vmem:[#allocation3 + $0x10] sm:$0xff]  ;;  %v3495_v37 = vld [vmem:[#allocation25_spill] sm:$0xff] }
 0x250   :  { %v1395_v25 = vsub.f32 %v1347_v59, %v1376_v39  ;;  %v2980_v4 = vpop.eup %1681  ;;  %v527_v44 = vmul.f32 1.442695, %v3489_v8  ;;  %1687 = vrcp.f32 %v2962_v18  ;;  %v3020_v50 = vsel %vm1034_vm0, %v2932_v48, 1.0  ;;  %v685_v8 = vld [vmem:[#allocation3 + $0x50] sm:$0xff] }
 0x251   :  { %v726_v6 = vpop.xlane.xlu0 %725  ;;  %v1403_v52 = vsel %vm3482_vm13, %v1387_v51, 0.0  ;;  %v1388_v28 = vsub.f32 %v1340_v62, %v1362_v42  ;;  %1689 = vpow2.f32 %v511_v19  ;;  %vm1224_vm7 = vcmp.eq.f32.partialorder %v1223_v31, 8.507059e+37 }
 0x252   :  { %v748_v22 = vadd.f32 %v726_v6, %v700_v40  ;;  %v734_v43 = vpop.xlane.xlu2 %733  ;;  %v1419_v26 = vmul.f32 -1.0, %v1403_v52  ;;  %v1411_v38 = vsel %vm3486_vm10, %v1395_v25, 0.0  ;;  %v1180_v40 = vand.u32 2147483648, %v2945_v0  ;;  %v3494_v52 = vld [vmem:[#allocation24_spill] sm:$0xff] }
 0x253   :  { %v752_v30 = vadd.f32 %v734_v43, %v704_v60  ;;  %v1427_v36 = vmul.f32 -1.0, %v1411_v38  ;;  %1691 = vpow2.f32 %v519_v21  ;;  %v1230_v59 = vmul.f32 %v2970_v15, %v2937_v61  ;;  %v681_v38 = vld [vmem:[#allocation3 + $0x30] sm:$0xff] }
 0x254   :  { %765 = vst.msk [vmem:[#allocation3 + $0x48] sm:$0xff] %vm38_vm15, %v748_v22  ;;  %v1684_v35 = vpop.eup %1683  ;;  %1453 = vperm.xlu2 %1603, %v1419_v26   ;;  %1473 = vperm.xlu0 %1601, %v1423_v53   ;;  %1693 = vpow2.f32 %v527_v44  ;;  %vm3492_vm1 = vcmp.gt.f32.partialorder %v2675_v55, 0.0  ;;  %v1170_v42 = vmul.f32 %v2980_v4, %v2945_v0  ;;  %v1238_v60 = vand.u32 2147483647, %v2937_v61  ;;  %v689_v44 = vld [vmem:[#allocation3 + $0x70] sm:$0xff] }
 0x255   :  { %769 = vst.msk [vmem:[#allocation3 + $0x68] sm:$0xff] %vm38_vm15, %v752_v30  ;;  %v1686_v57 = vpop.eup %1685  ;;  %1493 = vperm.xlu1 %1602, %v1427_v36   ;;  %v1354_v14 = vmul.f32 0.6931472, %v1684_v35  ;;  %v1404_v51 = vsel %vm3492_vm1, %v1388_v28, 0.0  ;;  %v3036_v25 = vor.u32 1.1754944e-38, %v1240_v47  ;;  %1695 = vrcp.f32 %v3020_v50  ;;  %v976_v36 = vld [vmem:[#allocation2 + $0x48] sm:$0xff] }
 0x256   :  { %v693_v6 = vmul.f32 %v1686_v57, %v677_v2  ;;  %vm3493_vm9 = vcmp.gt.f32.partialorder %v2649_v46, 0.0  ;;  %v1227_v10 = vsel %vm1224_vm7, %v1226_v24, %v1222_v9  ;;  %v1178_v55 = vand.u32 2147483647, %v2945_v0  ;;  %v3046_v62 = vpop.eup %1687  ;;  %v3051_v46 = vld [vmem:[#allocation5 + $0x78] sm:$0xff]  ;;  %v3512_v57 = vld [vmem:[#allocation22_spill] sm:$0xff] }
 0x257   :  { %v1384_v39 = vsub.f32 %v1336_v11, %v1354_v14  ;;  %v3044_v5 = vor.u32 1.1754944e-38, %v1180_v40  ;;  %v1420_v29 = vmul.f32 -1.0, %v1404_v51  ;;  %v1228_v19 = vmul.f32 %v1227_v10, %v1072_v45  ;;  %v1690_v58 = vpop.eup %1689  ;;  %v686_v0 = vld [vmem:[#allocation3 + $0x58] sm:$0xff] }
 0x258   :  { %v1231_v21 = vsub.f32 1.0, %v1230_v59  ;;  %v1171_v22 = vsub.f32 1.0, %v1170_v42  ;;  %vm1044_vm5 = vcmp.gt.f32.partialorder %v3039_v49, 0.0  ;;  %v3496_v30 = vsub.f32 %v3494_v52, %v3495_v37 }
 0x259   :  { %v712_v41 = vpop.xlane.xlu1 %711  ;;  %v1400_v31 = vsel %vm3493_vm9, %v1384_v39, 0.0  ;;  %v1692_v43 = vpop.eup %1691  ;;  %v1122_v53 = vsel %vm2992_vm4, %v2719_v20, %v1117_v33  ;;  %v1193_v32 = vand.u32 2147483647, %v2962_v18  ;;  %v1195_v28 = vand.u32 2147483648, %v2962_v18 }
 0x25a   :  { %v741_v54 = vadd.f32 %v712_v41, %v693_v6  ;;  %v1416_v7 = vmul.f32 -1.0, %v1400_v31  ;;  %v521_v26 = vmul.f32 1.442695, %v3496_v30  ;;  %v1694_v56 = vpop.eup %1693  ;;  %v1133_v27 = vand.u32 2147483647, %v3020_v50  ;;  %v1065_v31 = vld [vmem:[#allocation4 + $0x10] sm:$0xff] }
 0x25b   :  { %v992_v13 = vld [vmem:[#allocation3 + $0x48] sm:$0xff]  ;;  %v3064_v35 = vpop.eup %1695  ;;  %v1328_v24 = vsub.f32 %v1228_v19, %v976_v36  ;;  %vm1175_vm8 = vweird.f32 %v2980_v4  ;;  %v3070_v20 = vsel %vm1044_vm5, %v3039_v49, 1.0  ;;  %vm3362_vm6 = vcmp.gt.f32.partialorder %v3051_v46, 0.0 }
 0x25c   :  { %v1008_v3 = vadd.f32 1.6e-11, %v992_v13  ;;  %758 = vst.msk [vmem:[#allocation3 + $0x10] sm:$0xff] %vm38_vm15, %v741_v54  ;;  %1438 = vperm.xlu2 %1603, %v1416_v7   ;;  %1458 = vperm.xlu0 %1601, %v1420_v29   ;;  %v697_v17 = vmul.f32 %v1690_v58, %v681_v38  ;;  %v1232_v33 = vmul.f32 %v2970_v15, %v1231_v21  ;;  %vm3075_vm13 = vcmp.eq.f32.partialorder %v1178_v55, 8.507059e+37  ;;  %v3095_v55 = vld [vmem:[#allocation5 + $0x70] sm:$0xff]  ;;  %v3500_v29 = vld [vmem:[#allocation20_spill] sm:$0xff]  ;;  %vm3118_vm1 = vmor %vm1174_vm12, %vm1175_vm8 }
 0x25d   :  { %v1172_v47 = vmul.f32 %v2980_v4, %v1171_v22  ;;  %vm3363_vm4 = vcmp.gt.f32.partialorder %v3048_v23, 0.0  ;;  %v701_v11 = vmul.f32 %v1692_v43, %v685_v8  ;;  %v705_v14 = vmul.f32 %v1694_v56, %v689_v44  ;;  %v3499_v7 = vld [vmem:[#allocation18_spill] sm:$0xff]  ;;  %v3502_v58 = vld [vmem:[#allocation19_spill] sm:$0xff] }
 0x25e   :  { %1697 = vlog2.f32 %v1008_v3  ;;  %v1185_v40 = vmul.f32 %v3046_v62, %v2962_v18  ;;  %v1125_v51 = vmul.f32 %v3064_v35, %v3020_v50  ;;  %v3088_v45 = vsel %vm3362_vm6, %v3051_v46, 1.0  ;;  %v3503_v3 = vld [vmem:[#allocation21_spill] sm:$0xff] }
 0x25f   :  { %1699 = vpow2.f32 %v521_v26  ;;  %v1344_v41 = vadd.f32 1e-12, %v1328_v24  ;;  %v3093_v10 = vsel %vm3363_vm4, %v3048_v23, 1.0  ;;  %v3501_v13 = vsub.f32 %v3499_v7, %v3500_v29 }
 0x260   :  { %1701 = vrcp.f32 %v3070_v20  ;;  %v3504_v21 = vsub.f32 %v3502_v58, %v3503_v3  ;;  %vm1234_vm10 = vweird.f32 %v2937_v61  ;;  %vm3107_vm2 = vcmp.eq.f32.partialorder %v1238_v60, 8.507059e+37 }
 0x261   :  { %v720_v2 = vpop.xlane.xlu0 %719  ;;  %v736_v39 = vpop.xlane.xlu1 %735  ;;  %v513_v19 = vmul.f32 1.442695, %v3501_v13  ;;  %v1173_v37 = vadd.f32 %v2980_v4, %v1172_v47  ;;  %vm1235_vm7 = vweird.f32 %v2970_v15  ;;  %1703 = vrcp.f32 %v3088_v45 }
 0x262   :  { %v745_v9 = vadd.f32 %v720_v2, %v697_v17  ;;  %v728_v59 = vpop.xlane.xlu2 %727  ;;  %v753_v6 = vadd.f32 %v736_v39, %v705_v14  ;;  %v505_v22 = vmul.f32 1.442695, %v3504_v21  ;;  %v1123_v60 = vmul.f32 %v1122_v53, %v1065_v31  ;;  %vm3143_vm4 = vmor %vm1234_vm10, %vm1235_vm7 }
 0x263   :  { %v749_v42 = vadd.f32 %v728_v59, %v701_v11  ;;  %v985_v43 = vld [vmem:[#allocation3 + $0x10] sm:$0xff]  ;;  %v1233_v56 = vadd.f32 %v2970_v15, %v1232_v33  ;;  %vm1129_vm9 = vweird.f32 %v3020_v50  ;;  %1705 = vrcp.f32 %v3093_v10 }
 0x264   :  { %v1698_v54 = vpop.eup %1697  ;;  %762 = vst.msk [vmem:[#allocation3 + $0x30] sm:$0xff] %vm38_vm15, %v745_v9  ;;  %v1001_v26 = vadd.f32 1.6e-11, %v985_v43  ;;  %vm1045_vm6 = vcmp.gt.f32.partialorder %v3095_v55, 0.0  ;;  %v1186_v36 = vsub.f32 1.0, %v1185_v40  ;;  %v1126_v24 = vsub.f32 1.0, %v1125_v51 }
 0x265   :  { %766 = vst.msk [vmem:[#allocation3 + $0x50] sm:$0xff] %vm38_vm15, %v749_v42  ;;  %v1370_v30 = vmul.f32 0.6931472, %v1698_v54  ;;  %v1700_v8 = vpop.eup %1699  ;;  %v1177_v53 = vsel %vm3118_vm1, %v2980_v4, %v1173_v37  ;;  %vm1189_vm12 = vweird.f32 %v2962_v18  ;;  %v3134_v33 = vor.u32 1.1754944e-38, %v1195_v28  ;;  %v969_v11 = vld [vmem:[#allocation2 + $0x10] sm:$0xff] }
 0x266   :  { %770 = vst.msk [vmem:[#allocation3 + $0x70] sm:$0xff] %vm38_vm15, %v753_v6  ;;  %1707 = vlog2.f32 %v1001_v26  ;;  %v3128_v17 = vpop.eup %1701  ;;  %v1135_v47 = vand.u32 2147483648, %v3020_v50  ;;  %vm3509_vm8 = vcmp.gt.f32.partialorder %v2742_v34, 0.0  ;;  %vm1190_vm1 = vweird.f32 %v3046_v62  ;;  %v1069_v59 = vld [vmem:[#allocation4 + $0x30] sm:$0xff]  ;;  %v682_v26 = vld [vmem:[#allocation3 + $0x38] sm:$0xff] }
 0x267   :  { %v1392_v44 = vsub.f32 %v1344_v41, %v1370_v30  ;;  %1709 = vpow2.f32 %v513_v19  ;;  %v3151_v4 = vsel %vm1045_vm6, %v3095_v55, 1.0  ;;  %v702_v40 = vmul.f32 %v1700_v8, %v686_v0  ;;  %v3156_v61 = vpop.eup %1703  ;;  %v1073_v51 = vld [vmem:[#allocation4 + $0x50] sm:$0xff]  ;;  %v678_v8 = vld [vmem:[#allocation3 + $0x18] sm:$0xff] }
 0x268   :  { %1711 = vpow2.f32 %v505_v22  ;;  %v1321_v34 = vsub.f32 %v1123_v60, %v969_v11  ;;  %v1237_v9 = vsel %vm3143_vm4, %v2970_v15, %v1233_v56  ;;  %v1182_v6 = vsel %vm3075_vm13, %v3044_v5, %v1177_v53  ;;  %v3513_v5 = vld [vmem:[#allocation23_spill] sm:$0xff]  ;;  %v973_v53 = vld [vmem:[#allocation2 + $0x30] sm:$0xff] }
 0x269   :  { %v1408_v2 = vsel %vm3509_vm8, %v1392_v44, 0.0  ;;  %v1187_v41 = vmul.f32 %v3046_v62, %v1186_v36  ;;  %v1127_v31 = vmul.f32 %v3064_v35, %v1126_v24  ;;  %vm1130_vm10 = vweird.f32 %v3064_v35  ;;  %v3164_v54 = vpop.eup %1705 }
 0x26a   :  { %v1424_v28 = vmul.f32 -1.0, %v1408_v2  ;;  %v730_v39 = vpop.xlane.xlu1 %729  ;;  %v1275_v13 = vmul.f32 %v3128_v17, %v3070_v20  ;;  %1713 = vrcp.f32 %v3151_v4  ;;  %v3514_v58 = vsub.f32 %v3512_v57, %v3513_v5 }
 0x26b   :  { %v989_v42 = vld [vmem:[#allocation3 + $0x30] sm:$0xff]  ;;  %v750_v15 = vadd.f32 %v730_v39, %v702_v40  ;;  %v1242_v22 = vsel %vm3107_vm2, %v3036_v25, %v1237_v9  ;;  %v1183_v43 = vmul.f32 %v1182_v6, %v1069_v59  ;;  %vm3177_vm13 = vcmp.eq.f32.partialorder %v1133_v27, 8.507059e+37  ;;  %vm3197_vm2 = vmor %vm1129_vm9, %vm1130_vm10 }
 0x26c   :  { %1478 = vperm.xlu1 %1602, %v1424_v28   ;;  %v993_v7 = vld [vmem:[#allocation3 + $0x50] sm:$0xff]  ;;  %v1005_v29 = vadd.f32 1.6e-11, %v989_v42  ;;  %v1708_v19 = vpop.eup %1707  ;;  %v529_v3 = vmul.f32 1.442695, %v3514_v58  ;;  %v1243_v56 = vmul.f32 %v1242_v22, %v1073_v51  ;;  %vm3184_vm4 = vcmp.eq.f32.partialorder %v1193_v32, 8.507059e+37  ;;  %vm3212_vm9 = vmor %vm1189_vm12, %vm1190_vm1 }
 0x26d   :  { %v1009_v21 = vadd.f32 1.6e-11, %v993_v7  ;;  %v1710_v30 = vpop.eup %1709  ;;  %767 = vst.msk [vmem:[#allocation3 + $0x58] sm:$0xff] %vm38_vm15, %v750_v15  ;;  %v1337_v38 = vadd.f32 1e-12, %v1321_v34  ;;  %v977_v27 = vld [vmem:[#allocation2 + $0x50] sm:$0xff]  ;;  %v1245_v36 = vmul.f32 %v3164_v54, %v3093_v10  ;;  %v1188_v2 = vadd.f32 %v3046_v62, %v1187_v41 }
 0x26e   :  { %v1356_v60 = vmul.f32 0.6931472, %v1708_v19  ;;  %1715 = vlog2.f32 %v1005_v29  ;;  %v1712_v25 = vpop.eup %1711  ;;  %v1136_v44 = vor.u32 1.1754944e-38, %v1135_v47  ;;  %v1285_v0 = vand.u32 2147483648, %v3070_v20  ;;  %v1066_v47 = vld [vmem:[#allocation4 + $0x18] sm:$0xff] }
 0x26f   :  { %1717 = vlog2.f32 %v1009_v21  ;;  %v1128_v11 = vadd.f32 %v3064_v35, %v1127_v31  ;;  %v1276_v32 = vsub.f32 1.0, %v1275_v13  ;;  %v698_v14 = vmul.f32 %v1710_v30, %v682_v26  ;;  %v690_v30 = vld [vmem:[#allocation3 + $0x78] sm:$0xff] }
 0x270   :  { %v1385_v24 = vsub.f32 %v1337_v38, %v1356_v60  ;;  %1719 = vpow2.f32 %v529_v3  ;;  %v1325_v28 = vsub.f32 %v1183_v43, %v973_v53  ;;  %v1305_v40 = vmul.f32 %v3156_v61, %v3088_v45  ;;  %v3203_v34 = vpop.eup %1713  ;;  %v996_v43 = vld [vmem:[#allocation3 + $0x68] sm:$0xff] }
 0x271   :  { %v722_v9 = vpop.xlane.xlu2 %721  ;;  %v694_v59 = vmul.f32 %v1712_v25, %v678_v8  ;;  %vm3521_vm7 = vcmp.gt.f32.partialorder %v2629_v63, 0.0  ;;  %v1329_v51 = vsub.f32 %v1243_v56, %v977_v27  ;;  %v1283_v42 = vand.u32 2147483647, %v3070_v20 }
 0x272   :  { %v1401_v39 = vsel %vm3521_vm7, %v1385_v24, 0.0  ;;  %v746_v6 = vadd.f32 %v722_v9, %v698_v14  ;;  %v714_v41 = vpop.xlane.xlu0 %713  ;;  %v3216_v15 = vor.u32 1.1754944e-38, %v1285_v0  ;;  %v1246_v7 = vsub.f32 1.0, %v1245_v36 }
 0x273   :  { %v1417_v50 = vmul.f32 -1.0, %v1401_v39  ;;  %v742_v63 = vadd.f32 %v714_v41, %v694_v59  ;;  %v1192_v13 = vsel %vm3212_vm9, %v3046_v62, %v1188_v2  ;;  %v1132_v19 = vsel %vm3197_vm2, %v3064_v35, %v1128_v11  ;;  %v974_v41 = vld [vmem:[#allocation2 + $0x38] sm:$0xff] }
 0x274   :  { %v1716_v29 = vpop.eup %1715  ;;  %v1277_v57 = vmul.f32 %v3128_v17, %v1276_v32  ;;  %763 = vst.msk [vmem:[#allocation3 + $0x38] sm:$0xff] %vm38_vm15, %v746_v6  ;;  %v1341_v5 = vadd.f32 1e-12, %v1325_v28  ;;  %v1306_v3 = vsub.f32 1.0, %v1305_v40  ;;  %v1290_v21 = vmul.f32 %v3203_v34, %v3151_v4  ;;  %v994_v60 = vld [vmem:[#allocation3 + $0x58] sm:$0xff] }
 0x275   :  { %v1718_v18 = vpop.eup %1717  ;;  %1443 = vperm.xlu1 %1602, %v1417_v50   ;;  %v1364_v58 = vmul.f32 0.6931472, %v1716_v29  ;;  %759 = vst.msk [vmem:[#allocation3 + $0x18] sm:$0xff] %vm38_vm15, %v742_v63  ;;  %v1345_v22 = vadd.f32 1e-12, %v1329_v51  ;;  %vm1279_vm12 = vweird.f32 %v3070_v20  ;;  %v1197_v38 = vsel %vm3184_vm4, %v3134_v33, %v1192_v13  ;;  %v1076_v29 = vld [vmem:[#allocation4 + $0x68] sm:$0xff] }
 0x276   :  { %v1372_v62 = vmul.f32 0.6931472, %v1718_v18  ;;  %v1720_v35 = vpop.eup %1719  ;;  %vm1280_vm8 = vweird.f32 %v3128_v17  ;;  %v1247_v56 = vmul.f32 %v3164_v54, %v1246_v7  ;;  %v1137_v8 = vsel %vm3177_vm13, %v1136_v44, %v1132_v19  ;;  %v1070_v44 = vld [vmem:[#allocation4 + $0x38] sm:$0xff] }
 0x277   :  { %v1389_v26 = vsub.f32 %v1341_v5, %v1364_v58  ;;  %v1278_v27 = vadd.f32 %v3128_v17, %v1277_v57  ;;  %vm3238_vm1 = vcmp.eq.f32.partialorder %v1283_v42, 8.507059e+37  ;;  %vm1309_vm10 = vweird.f32 %v3088_v45  ;;  %v1074_v57 = vld [vmem:[#allocation4 + $0x58] sm:$0xff] }
 0x278   :  { %v1393_v25 = vsub.f32 %v1345_v22, %v1372_v62  ;;  %vm1249_vm2 = vweird.f32 %v3093_v10  ;;  %v1012_v52 = vadd.f32 1.6e-11, %v996_v43  ;;  %v1253_v36 = vand.u32 2147483647, %v3093_v10 }
 0x279   :  { %v1405_v33 = vsel %vm1037_vm11, %v1389_v26, 0.0  ;;  %v1291_v24 = vsub.f32 1.0, %v1290_v21  ;;  %v706_v53 = vmul.f32 %v1720_v35, %v690_v30  ;;  %v1307_v2 = vmul.f32 %v3156_v61, %v1306_v3  ;;  %vm3254_vm11 = vmor %vm1279_vm12, %vm1280_vm8  ;;  %v970_v3 = vld [vmem:[#allocation2 + $0x18] sm:$0xff]  ;;  %v980_v26 = vld [vmem:[#allocation2 + $0x68] sm:$0xff] }
 0x27a   :  { %v1409_v37 = vsel %vm1041_vm14, %v1393_v25, 0.0  ;;  %v1010_v11 = vadd.f32 1.6e-11, %v994_v60  ;;  %v738_v32 = vpop.xlane.xlu0 %737  ;;  %v1421_v28 = vmul.f32 -1.0, %v1405_v33  ;;  %v1248_v40 = vadd.f32 %v3164_v54, %v1247_v56  ;;  %v1078_v25 = vld [vmem:[#allocation4 + $0x78] sm:$0xff] }
 0x27b   :  { %v1425_v14 = vmul.f32 -1.0, %v1409_v37  ;;  %vm1250_vm14 = vweird.f32 %v3164_v54  ;;  %v754_v1 = vadd.f32 %v738_v32, %v706_v53  ;;  %v990_v9 = vld [vmem:[#allocation3 + $0x38] sm:$0xff]  ;;  %v1282_v59 = vsel %vm3254_vm11, %v3128_v17, %v1278_v27 }
 0x27c   :  { %vm1310_vm13 = vweird.f32 %v3156_v61  ;;  %v1255_v39 = vand.u32 2147483648, %v3093_v10  ;;  %v1006_v20 = vadd.f32 1.6e-11, %v990_v9  ;;  %v1198_v51 = vmul.f32 %v1197_v38, %v1070_v44  ;;  %v986_v42 = vld [vmem:[#allocation3 + $0x18] sm:$0xff]  ;;  %vm3272_vm4 = vmor %vm1249_vm2, %vm1250_vm14  ;;  %v997_v10 = vld [vmem:[#allocation3 + $0x70] sm:$0xff] }
 0x27d   :  { %1483 = vperm.xlu2 %1603, %v1425_v14   ;;  %1463 = vperm.xlu1 %1602, %v1421_v28   ;;  %1721 = vlog2.f32 %v1012_v52  ;;  %v1292_v6 = vmul.f32 %v3203_v34, %v1291_v24  ;;  %771 = vst.msk [vmem:[#allocation3 + $0x78] sm:$0xff] %vm38_vm15, %v754_v1  ;;  %v1002_v50 = vadd.f32 1.6e-11, %v986_v42  ;;  %v1138_v31 = vmul.f32 %v1137_v8, %v1066_v47  ;;  %vm3289_vm7 = vmor %vm1309_vm10, %vm1310_vm13  ;;  %v978_v8 = vld [vmem:[#allocation2 + $0x58] sm:$0xff] }
 0x27e   :  { %v1308_v7 = vadd.f32 %v3156_v61, %v1307_v2  ;;  %1723 = vlog2.f32 %v1010_v11  ;;  %v1313_v63 = vand.u32 2147483647, %v3088_v45  ;;  %v1315_v13 = vand.u32 2147483648, %v3088_v45 }
 0x27f   :  { %1725 = vlog2.f32 %v1006_v20  ;;  %v1252_v19 = vsel %vm3272_vm4, %v3164_v54, %v1248_v40  ;;  %vm1254_vm15 = vcmp.eq.f32.partialorder %v1253_v36, 8.507059e+37  ;;  %v1256_v18 = vor.u32 1.1754944e-38, %v1255_v39  ;;  %v982_v20 = vld [vmem:[#allocation2 + $0x78] sm:$0xff] }
 0x280   :  { %1727 = vlog2.f32 %v1002_v50  ;;  %v1300_v5 = vand.u32 2147483648, %v3151_v4  ;;  %v1326_v58 = vsub.f32 %v1198_v51, %v974_v41  ;;  %v1287_v21 = vsel %vm3238_vm1, %v3216_v15, %v1282_v59 }
 0x281   :  { %v1293_v54 = vadd.f32 %v3203_v34, %v1292_v6  ;;  %vm1295_vm9 = vweird.f32 %v3203_v34  ;;  %v1322_v62 = vsub.f32 %v1138_v31, %v970_v3  ;;  %v1288_v43 = vmul.f32 %v1287_v21, %v1076_v29 }
 0x282   :  { %v1312_v35 = vsel %vm3289_vm7, %v3156_v61, %v1308_v7  ;;  %v1257_v30 = vsel %vm1254_vm15, %v1256_v18, %v1252_v19  ;;  %v1316_v38 = vor.u32 1.1754944e-38, %v1315_v13  ;;  %v1013_v45 = vadd.f32 1.6e-11, %v997_v10  ;;  %v981_v13 = vld [vmem:[#allocation2 + $0x70] sm:$0xff] }
 0x283   :  { %v1722_v15 = vpop.eup %1721  ;;  %v1258_v60 = vmul.f32 %v1257_v30, %v1074_v57  ;;  %vm1294_vm12 = vweird.f32 %v3151_v4  ;;  %vm1314_vm8 = vcmp.eq.f32.partialorder %v1313_v63, 8.507059e+37  ;;  %v1298_v61 = vand.u32 2147483647, %v3151_v4 }
 0x284   :  { %v1724_v56 = vpop.eup %1723  ;;  %vm3301_vm1 = vmor %vm1294_vm12, %vm1295_vm9  ;;  %v1342_v33 = vadd.f32 1e-12, %v1326_v58  ;;  %v998_v52 = vld [vmem:[#allocation3 + $0x78] sm:$0xff]  ;;  %v1317_v36 = vsel %vm1314_vm8, %v1316_v38, %v1312_v35  ;;  %v1301_v53 = vor.u32 1.1754944e-38, %v1300_v5  ;;  %v1338_v2 = vadd.f32 1e-12, %v1322_v62 }
 0x285   :  { %v1726_v0 = vpop.eup %1725  ;;  %v1297_v24 = vsel %vm3301_vm1, %v3203_v34, %v1293_v54  ;;  %v1332_v11 = vsub.f32 %v1288_v43, %v980_v26  ;;  %v1014_v32 = vadd.f32 1.6e-11, %v998_v52  ;;  %v1318_v28 = vmul.f32 %v1317_v36, %v1078_v25 }
 0x286   :  { %v1728_v37 = vpop.eup %1727  ;;  %v1366_v44 = vmul.f32 0.6931472, %v1726_v0  ;;  %v1330_v47 = vsub.f32 %v1258_v60, %v978_v8  ;;  %1729 = vlog2.f32 %v1013_v45  ;;  %v1378_v40 = vmul.f32 0.6931472, %v1722_v15 }
 0x287   :  { %v1358_v14 = vmul.f32 0.6931472, %v1728_v37  ;;  %1731 = vlog2.f32 %v1014_v32  ;;  %vm1299_vm10 = vcmp.eq.f32.partialorder %v1298_v61, 8.507059e+37  ;;  %v1374_v9 = vmul.f32 0.6931472, %v1724_v56 }
 0x288   :  { %v1390_v4 = vsub.f32 %v1342_v33, %v1366_v44  ;;  %v1302_v59 = vsel %vm1299_vm10, %v1301_v53, %v1297_v24  ;;  %v1348_v39 = vadd.f32 1e-12, %v1332_v11  ;;  %v1334_v41 = vsub.f32 %v1318_v28, %v982_v20 }
 0x289   :  { %v1386_v1 = vsub.f32 %v1338_v2, %v1358_v14  ;;  %v1303_v51 = vmul.f32 %v1302_v59, %v1077_v16  ;;  %v1346_v50 = vadd.f32 1e-12, %v1330_v47 }
 0x28a   :  { %v1406_v34 = vsel %vm1038_vm3, %v1390_v4, 0.0  ;;  %v1396_v7 = vsub.f32 %v1348_v39, %v1378_v40  ;;  %v1350_v19 = vadd.f32 1e-12, %v1334_v41  ;;  %vm3534_vm3 = vcmp.gt.f32.partialorder %v3048_v23, 0.0 }
 0x28b   :  { %v1422_v42 = vmul.f32 -1.0, %v1406_v34  ;;  %v1402_v6 = vsel %vm1034_vm0, %v1386_v1, 0.0  ;;  %v1394_v29 = vsub.f32 %v1346_v50, %v1374_v9  ;;  %v1333_v57 = vsub.f32 %v1303_v51, %v981_v13 }
 0x28c   :  { %v1418_v31 = vmul.f32 -1.0, %v1402_v6  ;;  %v1730_v17 = vpop.eup %1729  ;;  %v1412_v18 = vsel %vm1044_vm5, %v1396_v7, 0.0  ;;  %vm3535_vm0 = vcmp.gt.f32.partialorder %v3051_v46, 0.0 }
 0x28d   :  { %1468 = vperm.xlu2 %1603, %v1422_v42   ;;  %v1732_v63 = vpop.eup %1731  ;;  %v1410_v48 = vsel %vm3534_vm3, %v1394_v29, 0.0  ;;  %v1380_v5 = vmul.f32 0.6931472, %v1730_v17  ;;  %v1428_v58 = vmul.f32 -1.0, %v1412_v18  ;;  %v1349_v21 = vadd.f32 1e-12, %v1333_v57 }
 0x28e   :  { %1448 = vperm.xlu0 %1601, %v1418_v31   ;;  %v1382_v12 = vmul.f32 0.6931472, %v1732_v63  ;;  %v1426_v54 = vmul.f32 -1.0, %v1410_v48 }
 0x28f   :  { %v1397_v62 = vsub.f32 %v1349_v21, %v1380_v5 }
 0x290   :  { %v1398_v10 = vsub.f32 %v1350_v19, %v1382_v12 }
 0x291   :  { %v1413_v49 = vsel %vm1045_vm6, %v1397_v62, 0.0 }
 0x292   :  { %v1414_v3 = vsel %vm3535_vm0, %v1398_v10, 0.0  ;;  %v1429_v43 = vmul.f32 -1.0, %v1413_v49 }
 0x293   :  { %v1430_v22 = vmul.f32 -1.0, %v1414_v3 }
 0x295   :  { %1498 = vperm.xlu2 %1603, %v1428_v58   ;;  %1508 = vperm.xlu1 %1602, %v1430_v22  }
 0x296   :  { %1488 = vperm.xlu0 %1601, %v1426_v54  }
 0x29e   :  { %1503 = vperm.xlu0 %1601, %v1429_v43  }
 0x2ae   :  { %v1454_v35 = vpop.permute.xlu2 %1453 }
 0x2af   :  { %1515 = vst [vmem:[#allocation9 + $0x20] sm:$0xff] %v1454_v35 }
 0x2b6   :  { %v1439_v23 = vpop.permute.xlu2 %1438 }
 0x2b7   :  { %1512 = vst [vmem:[#allocation9 + $0x8] sm:$0xff] %v1439_v23 }
 0x2be   :  { %v1434_v30 = vpop.permute.xlu0 %1433 }
 0x2bf   :  { %1511 = vst [vmem:[#allocation9] sm:$0xff] %v1434_v30 }
 0x2c6   :  { %v1474_v46 = vpop.permute.xlu0 %1473 }
 0x2c7   :  { %v1494_v15 = vpop.permute.xlu1 %1493  ;;  %1519 = vst [vmem:[#allocation9 + $0x40] sm:$0xff] %v1474_v46 }
 0x2c8   :  { %1523 = vst [vmem:[#allocation9 + $0x60] sm:$0xff] %v1494_v15 }
 0x2ce   :  { %v1459_v26 = vpop.permute.xlu0 %1458 }
 0x2cf   :  { %1516 = vst [vmem:[#allocation9 + $0x28] sm:$0xff] %v1459_v26 }
 0x2d7   :  { %v1484_v38 = vpop.permute.xlu2 %1483 }
 0x2d8   :  { %1521 = vst [vmem:[#allocation9 + $0x50] sm:$0xff] %v1484_v38 }
 0x2de   :  { %v1479_v60 = vpop.permute.xlu1 %1478 }
 0x2df   :  { %1520 = vst [vmem:[#allocation9 + $0x48] sm:$0xff] %v1479_v60 }
 0x2e7   :  { %v1469_v55 = vpop.permute.xlu2 %1468  ;;  %v1444_v45 = vpop.permute.xlu1 %1443 }
 0x2e8   :  { %1518 = vst [vmem:[#allocation9 + $0x38] sm:$0xff] %v1469_v55 }
 0x2e9   :  { %1513 = vst [vmem:[#allocation9 + $0x10] sm:$0xff] %v1444_v45 }
 0x2ef   :  { %v1499_v56 = vpop.permute.xlu2 %1498  ;;  %v1464_v25 = vpop.permute.xlu1 %1463 }
 0x2f0   :  { %1524 = vst [vmem:[#allocation9 + $0x68] sm:$0xff] %v1499_v56 }
 0x2f1   :  { %1517 = vst [vmem:[#allocation9 + $0x30] sm:$0xff] %v1464_v25 }
 0x300   :  { %v1449_v8 = vpop.permute.xlu0 %1448 }
 0x301   :  { %1514 = vst [vmem:[#allocation9 + $0x18] sm:$0xff] %v1449_v8 }
 0x307   :  { %v1509_v27 = vpop.permute.xlu1 %1508 }
 0x308   :  { %v1489_v61 = vpop.permute.xlu0 %1488  ;;  %1526 = vst [vmem:[#allocation9 + $0x78] sm:$0xff] %v1509_v27 }
 0x309   :  { %1522 = vst [vmem:[#allocation9 + $0x58] sm:$0xff] %v1489_v61 }
 0x310   :  { %v1504_v0 = vpop.permute.xlu0 %1503 }
 0x311   :  { %1525 = vst [vmem:[#allocation9 + $0x70] sm:$0xff] %v1504_v0 }
 0x312   :  { %1539 = dma.vmem_to_hbm [thread:$0]  %s1532_s8, 2048, %s1534_s11, [#allocation8], %s1786_s20, %s1786_s20, %s1787_s21  }
 0x313   :  { %1783 = dma.done.wait [#allocation8], 2048  }
 0x314   :  { %1784 = vsyncadd [#allocation8], 4294965248 }
 0x315   :  { %1544 = vsyncpa [#allocation7], 1 }
 0x316   :  { %1545 = vsyncpa [#allocation8], 1 }

</bundles_post_ra>
